<compile_context>
chip_gen: v7x
topology: tpu7x:2x2x1
jax: 0.10.0
libtpu: 0.0.40
codegen_flags: <defaults>
</compile_context>

<pallas_src>
import jax
import jax.numpy as jnp
from jax.experimental import pallas as pl
from jax.experimental.pallas import tpu as pltpu

EMBEDDING_DIM = 100
HIDDEN_DIM = 128
OUTPUT_DIM = 5


def lstm_fc_kernel(x_ref, w_ih_ref, w_hh_ref, b_ref, w_fc_ref, b_fc_ref,
                   out_ref, gx_ref):
    """Whole-sequence LSTM + final FC in one kernel invocation.

    x_ref    : (T, Bp, Ep)  bf16  time-major padded input (Bp = 16-granule)
    w_ih_ref : (Ep, 4H)     bf16  input->gates weights, columns in [i,f,o,g]
    w_hh_ref : (H, 4H)      bf16  hidden->gates weights, columns in [i,f,o,g]
    b_ref    : (1, 4H)      f32   combined bias (b_ih + b_hh), [i,f,o,g]
    w_fc_ref : (H, Op)      bf16  final linear weights (pre-transposed, padded)
    b_fc_ref : (1, Op)      f32   final linear bias (padded)
    out_ref  : (Bp, Op)     f32   logits (padding sliced off outside)
    gx_ref   : (T, Bp, 4H)  f32   scratch: precomputed input pre-activations
    """
    T, Bp, Ep = x_ref.shape
    H = w_hh_ref.shape[0]

    # ---- Phase 1: hoisted input projection — one big MXU GEMM, bias folded.
    xm = x_ref[...].reshape(T * Bp, Ep)                                  # bf16
    gx = jnp.dot(xm, w_ih_ref[...], preferred_element_type=jnp.float32)
    gx = gx + b_ref[...]                                                 # f32
    gx_ref[...] = gx.reshape(T, Bp, 4 * H)

    # ---- Phase 2: serial recurrence; h/c live as loop-carried vregs.
    h0 = jnp.zeros((Bp, H), jnp.float32)
    c0 = jnp.zeros((Bp, H), jnp.float32)

    def step(t, carry):
        h, c = carry
        gates = gx_ref[t] + jnp.dot(
            h.astype(jnp.bfloat16), w_hh_ref[...],
            preferred_element_type=jnp.float32)                          # (Bp, 4H)
        # Gate columns pre-permuted to [i, f, o, g]:
        # one sigmoid over 3H contiguous lanes, one tanh over H lanes.
        sig = jax.nn.sigmoid(gates[:, 0:3 * H])
        i_g = sig[:, 0:H]
        f_g = sig[:, H:2 * H]
        o_g = sig[:, 2 * H:3 * H]
        g_g = jnp.tanh(gates[:, 3 * H:4 * H])
        c_new = f_g * c + i_g * g_g
        h_new = o_g * jnp.tanh(c_new)
        return (h_new, c_new)

    h_fin, _ = jax.lax.fori_loop(0, T, step, (h0, c0), unroll=True)

    # ---- Phase 3: fused FC directly on the final hidden-state carry.
    out_ref[...] = (
        jnp.dot(h_fin.astype(jnp.bfloat16), w_fc_ref[...],
                preferred_element_type=jnp.float32)
        + b_fc_ref[...]
    ).astype(out_ref.dtype)


def _permute_gates_ifog(w):
    """Reorder PyTorch gate blocks [i, f, g, o] -> [i, f, o, g] along axis 0."""
    H4 = w.shape[0]
    H = H4 // 4
    return jnp.concatenate([w[0:2 * H], w[3 * H:4 * H], w[2 * H:3 * H]], axis=0)


def rating_predictor_forward(x, params):
    """x: (B, T, E) float32. Returns (B, OUTPUT_DIM) float32 logits."""
    B, T, E = x.shape
    H = params["w_hh"].shape[1]
    O = params["w_fc"].shape[0]

    # Batch padded to the bf16 sublane granule (16) so x vregs are full packed
    # (16,128) tiles; E / O padded to the 128-lane granule.
    Bp = max(16, ((B + 15) // 16) * 16)
    Ep = ((E + 127) // 128) * 128
    Op = ((O + 127) // 128) * 128

    # Layout prep (plain XLA): time-major, pre-transposed bf16 weights with
    # gate columns permuted to [i, f, o, g], zero padding everywhere so padded
    # elements contribute nothing.
    x_tbe = jnp.transpose(x, (1, 0, 2))                                   # (T, B, E)
    x_pad = jnp.zeros((T, Bp, Ep), jnp.bfloat16).at[:, :B, :E].set(
        x_tbe.astype(jnp.bfloat16))
    w_ih_t = jnp.zeros((Ep, 4 * H), jnp.bfloat16).at[:E, :].set(
        _permute_gates_ifog(params["w_ih"]).T.astype(jnp.bfloat16))
    w_hh_t = _permute_gates_ifog(params["w_hh"]).T.astype(jnp.bfloat16)   # (H, 4H)
    b = _permute_gates_ifog(
        params["b_ih"] + params["b_hh"])[None, :].astype(jnp.float32)     # (1, 4H)
    w_fc_t = jnp.zeros((H, Op), jnp.bfloat16).at[:, :O].set(
        params["w_fc"].T.astype(jnp.bfloat16))
    b_fc = jnp.zeros((1, Op), jnp.float32).at[:, :O].set(
        params["b_fc"][None, :].astype(jnp.float32))

    # VMEM footprint (bytes): inputs + output + gx scratch (no h/c scratch).
    vmem_bytes = (x_pad.size * 2 + w_ih_t.size * 2 + w_hh_t.size * 2
                  + b.size * 4 + w_fc_t.size * 2 + b_fc.size * 4
                  + Bp * Op * 4 + T * Bp * 4 * H * 4)
    vmem_limit = int(min(100 << 20, max(16 << 20, 2 * vmem_bytes)))

    cost = pl.CostEstimate(
        flops=2 * T * Bp * Ep * 4 * H + 2 * T * Bp * H * 4 * H + 2 * Bp * H * Op,
        transcendentals=T * Bp * 5 * H,
        bytes_accessed=int(vmem_bytes),
    )

    vmem = pl.BlockSpec(memory_space=pltpu.MemorySpace.VMEM)
    out = pl.pallas_call(
        lstm_fc_kernel,
        out_shape=jax.ShapeDtypeStruct((Bp, Op), jnp.float32),
        in_specs=[vmem, vmem, vmem, vmem, vmem, vmem],
        out_specs=vmem,
        scratch_shapes=[
            pltpu.VMEM((T, Bp, 4 * H), jnp.float32),   # gates_x
        ],
        compiler_params=pltpu.CompilerParams(vmem_limit_bytes=vmem_limit),
        cost_estimate=cost,
    )(x_pad, w_ih_t, w_hh_t, b, w_fc_t, b_fc)
    return out[:B, :O]


def init_params(key, E=EMBEDDING_DIM, H=HIDDEN_DIM, O=OUTPUT_DIM):
    """Deterministic init mirroring PyTorch's uniform(-1/sqrt(H), 1/sqrt(H))."""
    ks = jax.random.split(key, 6)
    k = 1.0 / jnp.sqrt(jnp.float32(H))
    u = lambda kk, shape: jax.random.uniform(kk, shape, jnp.float32, -k, k)
    return {
        "w_ih": u(ks[0], (4 * H, E)),
        "w_hh": u(ks[1], (4 * H, H)),
        "b_ih": u(ks[2], (4 * H,)),
        "b_hh": u(ks[3], (4 * H,)),
        "w_fc": u(ks[4], (O, H)),
        "b_fc": u(ks[5], (O,)),
    }


def ref_forward(x, p):
    """Pure-JAX f32 reference (matches PyTorch LSTM + Linear semantics)."""
    B, T, E = x.shape
    H = p["w_hh"].shape[1]

    def step(carry, x_t):
        h, c = carry
        gates = x_t @ p["w_ih"].T + p["b_ih"] + h @ p["w_hh"].T + p["b_hh"]
        i, f, g, o = jnp.split(gates, 4, axis=-1)
        i, f, o = jax.nn.sigmoid(i), jax.nn.sigmoid(f), jax.nn.sigmoid(o)
        g = jnp.tanh(g)
        c = f * c + i * g
        h = o * jnp.tanh(c)
        return (h, c), None

    h0 = jnp.zeros((B, H), jnp.float32)
    c0 = jnp.zeros((B, H), jnp.float32)
    (h, _), _ = jax.lax.scan(step, (h0, c0), jnp.transpose(x, (1, 0, 2)))
    return h @ p["w_fc"].T + p["b_fc"]


if __name__ == "__main__":
    key = jax.random.PRNGKey(0)
    k_x, k_p = jax.random.split(key)

    B, T = 2, 8
    x = jax.random.normal(k_x, (B, T, EMBEDDING_DIM), jnp.float32)
    params = init_params(k_p)

    out = rating_predictor_forward(x, params)
    out = jax.block_until_ready(out)

    ref = ref_forward(x, params)
    assert out.shape == (B, OUTPUT_DIM), out.shape
    # bf16 MXU operands vs. pure-f32 reference -> loosened tolerance.
    assert jnp.allclose(out, ref, atol=2e-2, rtol=2e-2), (out, ref)

    print("KERNEL_OK")
</pallas_src>

<mosaic_0001>
module attributes {stable_mosaic.version = 11 : i64} {
  func.func @lstm_fc_kernel(%arg0: memref<8x16x128xbf16, #tpu.memory_space<vmem>>, %arg1: memref<128x512xbf16, #tpu.memory_space<vmem>>, %arg2: memref<128x512xbf16, #tpu.memory_space<vmem>>, %arg3: memref<1x512xf32, #tpu.memory_space<vmem>>, %arg4: memref<128x128xbf16, #tpu.memory_space<vmem>>, %arg5: memref<1x128xf32, #tpu.memory_space<vmem>>, %arg6: memref<16x128xf32, #tpu.memory_space<vmem>>, %arg7: memref<8x16x512xf32, #tpu.memory_space<vmem>>) attributes {dimension_semantics = [], scalar_prefetch = 0 : i64, scratch_operands = 1 : i64, tpu.core_type = #tpu.core_type<tc>} {
    %c0 = arith.constant 0 : index
    %c0_0 = arith.constant 0 : index
    %c0_1 = arith.constant 0 : index
    %0 = vector.load %arg0[%c0, %c0_0, %c0_1] : memref<8x16x128xbf16, #tpu.memory_space<vmem>>, vector<8x16x128xbf16>
    %1 = vector.shape_cast %0 : vector<8x16x128xbf16> to vector<128x128xbf16>
    %c0_2 = arith.constant 0 : index
    %c0_3 = arith.constant 0 : index
    %2 = vector.load %arg1[%c0_2, %c0_3] : memref<128x512xbf16, #tpu.memory_space<vmem>>, vector<128x512xbf16>
    %cst = arith.constant dense<0.000000e+00> : vector<128x512xf32>
    %3 = tpu.matmul %1, %2, %cst {dimension_numbers = #tpu.dot_dimension_numbers<[1], [0], [0], [1], [0, 0, 1, 1], [], []>} : vector<128x128xbf16>, vector<128x512xbf16>, vector<128x512xf32> -> vector<128x512xf32>
    %c0_4 = arith.constant 0 : index
    %c0_5 = arith.constant 0 : index
    %4 = vector.load %arg3[%c0_4, %c0_5] : memref<1x512xf32, #tpu.memory_space<vmem>>, vector<1x512xf32>
    %5 = vector.broadcast %4 : vector<1x512xf32> to vector<128x512xf32>
    %6 = arith.addf %3, %5 : vector<128x512xf32>
    %7 = vector.shape_cast %6 : vector<128x512xf32> to vector<8x16x512xf32>
    %c0_6 = arith.constant 0 : index
    %c0_7 = arith.constant 0 : index
    %c0_8 = arith.constant 0 : index
    %8 = vector.load %arg7[%c0_6, %c0_7, %c0_8] : memref<8x16x512xf32, #tpu.memory_space<vmem>>, vector<8x16x512xf32>
    tpu.vector_store %arg7[%c0_6, %c0_7, %c0_8], %7 {strides = array<i32>} : memref<8x16x512xf32, #tpu.memory_space<vmem>>, vector<8x16x512xf32>,
    %cst_9 = arith.constant 0.000000e+00 : f32
    %9 = vector.broadcast %cst_9 : f32 to vector<16x128xf32>
    %cst_10 = arith.constant 0.000000e+00 : f32
    %10 = vector.broadcast %cst_10 : f32 to vector<16x128xf32>
    %c0_i32 = arith.constant 0 : i32
    %11 = arith.index_cast %c0_i32 : i32 to index
    %c0_11 = arith.constant 0 : index
    %c0_12 = arith.constant 0 : index
    %12 = vector.load %arg7[%11, %c0_11, %c0_12] : memref<8x16x512xf32, #tpu.memory_space<vmem>>, vector<1x16x512xf32>
    %13 = vector.shape_cast %12 : vector<1x16x512xf32> to vector<16x512xf32>
    %14 = arith.truncf %9 : vector<16x128xf32> to vector<16x128xbf16>
    %c0_13 = arith.constant 0 : index
    %c0_14 = arith.constant 0 : index
    %15 = vector.load %arg2[%c0_13, %c0_14] : memref<128x512xbf16, #tpu.memory_space<vmem>>, vector<128x512xbf16>
    %cst_15 = arith.constant dense<0.000000e+00> : vector<16x512xf32>
    %16 = tpu.matmul %14, %15, %cst_15 {dimension_numbers = #tpu.dot_dimension_numbers<[1], [0], [0], [1], [0, 0, 1, 1], [], []>} : vector<16x128xbf16>, vector<128x512xbf16>, vector<16x512xf32> -> vector<16x512xf32>
    %17 = arith.addf %13, %16 : vector<16x512xf32>
    %18 = vector.extract_strided_slice %17 {offsets = [0, 0], sizes = [16, 384], strides = [1, 1]} : vector<16x512xf32> to vector<16x384xf32>
    %19 = arith.negf %18 : vector<16x384xf32>
    %20 = math.exp %19 : vector<16x384xf32>
    %cst_16 = arith.constant 1.000000e+00 : f32
    %21 = vector.broadcast %cst_16 : f32 to vector<16x384xf32>
    %22 = arith.addf %21, %20 : vector<16x384xf32>
    %23 = arith.divf %21, %22 : vector<16x384xf32>
    %24 = vector.extract_strided_slice %23 {offsets = [0, 0], sizes = [16, 128], strides = [1, 1]} : vector<16x384xf32> to vector<16x128xf32>
    %25 = vector.extract_strided_slice %23 {offsets = [0, 128], sizes = [16, 128], strides = [1, 1]} : vector<16x384xf32> to vector<16x128xf32>
    %26 = vector.extract_strided_slice %23 {offsets = [0, 256], sizes = [16, 128], strides = [1, 1]} : vector<16x384xf32> to vector<16x128xf32>
    %27 = vector.extract_strided_slice %17 {offsets = [0, 384], sizes = [16, 128], strides = [1, 1]} : vector<16x512xf32> to vector<16x128xf32>
    %28 = math.tanh %27 : vector<16x128xf32>
    %29 = arith.mulf %25, %10 : vector<16x128xf32>
    %30 = arith.mulf %24, %28 : vector<16x128xf32>
    %31 = arith.addf %29, %30 : vector<16x128xf32>
    %32 = math.tanh %31 : vector<16x128xf32>
    %33 = arith.mulf %26, %32 : vector<16x128xf32>
    %c1_i32 = arith.constant 1 : i32
    %34 = arith.index_cast %c1_i32 : i32 to index
    %c0_17 = arith.constant 0 : index
    %c0_18 = arith.constant 0 : index
    %35 = vector.load %arg7[%34, %c0_17, %c0_18] : memref<8x16x512xf32, #tpu.memory_space<vmem>>, vector<1x16x512xf32>
    %36 = vector.shape_cast %35 : vector<1x16x512xf32> to vector<16x512xf32>
    %37 = arith.truncf %33 : vector<16x128xf32> to vector<16x128xbf16>
    %c0_19 = arith.constant 0 : index
    %c0_20 = arith.constant 0 : index
    %38 = vector.load %arg2[%c0_19, %c0_20] : memref<128x512xbf16, #tpu.memory_space<vmem>>, vector<128x512xbf16>
    %cst_21 = arith.constant dense<0.000000e+00> : vector<16x512xf32>
    %39 = tpu.matmul %37, %38, %cst_21 {dimension_numbers = #tpu.dot_dimension_numbers<[1], [0], [0], [1], [0, 0, 1, 1], [], []>} : vector<16x128xbf16>, vector<128x512xbf16>, vector<16x512xf32> -> vector<16x512xf32>
    %40 = arith.addf %36, %39 : vector<16x512xf32>
    %41 = vector.extract_strided_slice %40 {offsets = [0, 0], sizes = [16, 384], strides = [1, 1]} : vector<16x512xf32> to vector<16x384xf32>
    %42 = arith.negf %41 : vector<16x384xf32>
    %43 = math.exp %42 : vector<16x384xf32>
    %cst_22 = arith.constant 1.000000e+00 : f32
    %44 = vector.broadcast %cst_22 : f32 to vector<16x384xf32>
    %45 = arith.addf %44, %43 : vector<16x384xf32>
    %46 = arith.divf %44, %45 : vector<16x384xf32>
    %47 = vector.extract_strided_slice %46 {offsets = [0, 0], sizes = [16, 128], strides = [1, 1]} : vector<16x384xf32> to vector<16x128xf32>
    %48 = vector.extract_strided_slice %46 {offsets = [0, 128], sizes = [16, 128], strides = [1, 1]} : vector<16x384xf32> to vector<16x128xf32>
    %49 = vector.extract_strided_slice %46 {offsets = [0, 256], sizes = [16, 128], strides = [1, 1]} : vector<16x384xf32> to vector<16x128xf32>
    %50 = vector.extract_strided_slice %40 {offsets = [0, 384], sizes = [16, 128], strides = [1, 1]} : vector<16x512xf32> to vector<16x128xf32>
    %51 = math.tanh %50 : vector<16x128xf32>
    %52 = arith.mulf %48, %31 : vector<16x128xf32>
    %53 = arith.mulf %47, %51 : vector<16x128xf32>
    %54 = arith.addf %52, %53 : vector<16x128xf32>
    %55 = math.tanh %54 : vector<16x128xf32>
    %56 = arith.mulf %49, %55 : vector<16x128xf32>
    %c2_i32 = arith.constant 2 : i32
    %57 = arith.index_cast %c2_i32 : i32 to index
    %c0_23 = arith.constant 0 : index
    %c0_24 = arith.constant 0 : index
    %58 = vector.load %arg7[%57, %c0_23, %c0_24] : memref<8x16x512xf32, #tpu.memory_space<vmem>>, vector<1x16x512xf32>
    %59 = vector.shape_cast %58 : vector<1x16x512xf32> to vector<16x512xf32>
    %60 = arith.truncf %56 : vector<16x128xf32> to vector<16x128xbf16>
    %c0_25 = arith.constant 0 : index
    %c0_26 = arith.constant 0 : index
    %61 = vector.load %arg2[%c0_25, %c0_26] : memref<128x512xbf16, #tpu.memory_space<vmem>>, vector<128x512xbf16>
    %cst_27 = arith.constant dense<0.000000e+00> : vector<16x512xf32>
    %62 = tpu.matmul %60, %61, %cst_27 {dimension_numbers = #tpu.dot_dimension_numbers<[1], [0], [0], [1], [0, 0, 1, 1], [], []>} : vector<16x128xbf16>, vector<128x512xbf16>, vector<16x512xf32> -> vector<16x512xf32>
    %63 = arith.addf %59, %62 : vector<16x512xf32>
    %64 = vector.extract_strided_slice %63 {offsets = [0, 0], sizes = [16, 384], strides = [1, 1]} : vector<16x512xf32> to vector<16x384xf32>
    %65 = arith.negf %64 : vector<16x384xf32>
    %66 = math.exp %65 : vector<16x384xf32>
    %cst_28 = arith.constant 1.000000e+00 : f32
    %67 = vector.broadcast %cst_28 : f32 to vector<16x384xf32>
    %68 = arith.addf %67, %66 : vector<16x384xf32>
    %69 = arith.divf %67, %68 : vector<16x384xf32>
    %70 = vector.extract_strided_slice %69 {offsets = [0, 0], sizes = [16, 128], strides = [1, 1]} : vector<16x384xf32> to vector<16x128xf32>
    %71 = vector.extract_strided_slice %69 {offsets = [0, 128], sizes = [16, 128], strides = [1, 1]} : vector<16x384xf32> to vector<16x128xf32>
    %72 = vector.extract_strided_slice %69 {offsets = [0, 256], sizes = [16, 128], strides = [1, 1]} : vector<16x384xf32> to vector<16x128xf32>
    %73 = vector.extract_strided_slice %63 {offsets = [0, 384], sizes = [16, 128], strides = [1, 1]} : vector<16x512xf32> to vector<16x128xf32>
    %74 = math.tanh %73 : vector<16x128xf32>
    %75 = arith.mulf %71, %54 : vector<16x128xf32>
    %76 = arith.mulf %70, %74 : vector<16x128xf32>
    %77 = arith.addf %75, %76 : vector<16x128xf32>
    %78 = math.tanh %77 : vector<16x128xf32>
    %79 = arith.mulf %72, %78 : vector<16x128xf32>
    %c3_i32 = arith.constant 3 : i32
    %80 = arith.index_cast %c3_i32 : i32 to index
    %c0_29 = arith.constant 0 : index
    %c0_30 = arith.constant 0 : index
    %81 = vector.load %arg7[%80, %c0_29, %c0_30] : memref<8x16x512xf32, #tpu.memory_space<vmem>>, vector<1x16x512xf32>
    %82 = vector.shape_cast %81 : vector<1x16x512xf32> to vector<16x512xf32>
    %83 = arith.truncf %79 : vector<16x128xf32> to vector<16x128xbf16>
    %c0_31 = arith.constant 0 : index
    %c0_32 = arith.constant 0 : index
    %84 = vector.load %arg2[%c0_31, %c0_32] : memref<128x512xbf16, #tpu.memory_space<vmem>>, vector<128x512xbf16>
    %cst_33 = arith.constant dense<0.000000e+00> : vector<16x512xf32>
    %85 = tpu.matmul %83, %84, %cst_33 {dimension_numbers = #tpu.dot_dimension_numbers<[1], [0], [0], [1], [0, 0, 1, 1], [], []>} : vector<16x128xbf16>, vector<128x512xbf16>, vector<16x512xf32> -> vector<16x512xf32>
    %86 = arith.addf %82, %85 : vector<16x512xf32>
    %87 = vector.extract_strided_slice %86 {offsets = [0, 0], sizes = [16, 384], strides = [1, 1]} : vector<16x512xf32> to vector<16x384xf32>
    %88 = arith.negf %87 : vector<16x384xf32>
    %89 = math.exp %88 : vector<16x384xf32>
    %cst_34 = arith.constant 1.000000e+00 : f32
    %90 = vector.broadcast %cst_34 : f32 to vector<16x384xf32>
    %91 = arith.addf %90, %89 : vector<16x384xf32>
    %92 = arith.divf %90, %91 : vector<16x384xf32>
    %93 = vector.extract_strided_slice %92 {offsets = [0, 0], sizes = [16, 128], strides = [1, 1]} : vector<16x384xf32> to vector<16x128xf32>
    %94 = vector.extract_strided_slice %92 {offsets = [0, 128], sizes = [16, 128], strides = [1, 1]} : vector<16x384xf32> to vector<16x128xf32>
    %95 = vector.extract_strided_slice %92 {offsets = [0, 256], sizes = [16, 128], strides = [1, 1]} : vector<16x384xf32> to vector<16x128xf32>
    %96 = vector.extract_strided_slice %86 {offsets = [0, 384], sizes = [16, 128], strides = [1, 1]} : vector<16x512xf32> to vector<16x128xf32>
    %97 = math.tanh %96 : vector<16x128xf32>
    %98 = arith.mulf %94, %77 : vector<16x128xf32>
    %99 = arith.mulf %93, %97 : vector<16x128xf32>
    %100 = arith.addf %98, %99 : vector<16x128xf32>
    %101 = math.tanh %100 : vector<16x128xf32>
    %102 = arith.mulf %95, %101 : vector<16x128xf32>
    %c4_i32 = arith.constant 4 : i32
    %103 = arith.index_cast %c4_i32 : i32 to index
    %c0_35 = arith.constant 0 : index
    %c0_36 = arith.constant 0 : index
    %104 = vector.load %arg7[%103, %c0_35, %c0_36] : memref<8x16x512xf32, #tpu.memory_space<vmem>>, vector<1x16x512xf32>
    %105 = vector.shape_cast %104 : vector<1x16x512xf32> to vector<16x512xf32>
    %106 = arith.truncf %102 : vector<16x128xf32> to vector<16x128xbf16>
    %c0_37 = arith.constant 0 : index
    %c0_38 = arith.constant 0 : index
    %107 = vector.load %arg2[%c0_37, %c0_38] : memref<128x512xbf16, #tpu.memory_space<vmem>>, vector<128x512xbf16>
    %cst_39 = arith.constant dense<0.000000e+00> : vector<16x512xf32>
    %108 = tpu.matmul %106, %107, %cst_39 {dimension_numbers = #tpu.dot_dimension_numbers<[1], [0], [0], [1], [0, 0, 1, 1], [], []>} : vector<16x128xbf16>, vector<128x512xbf16>, vector<16x512xf32> -> vector<16x512xf32>
    %109 = arith.addf %105, %108 : vector<16x512xf32>
    %110 = vector.extract_strided_slice %109 {offsets = [0, 0], sizes = [16, 384], strides = [1, 1]} : vector<16x512xf32> to vector<16x384xf32>
    %111 = arith.negf %110 : vector<16x384xf32>
    %112 = math.exp %111 : vector<16x384xf32>
    %cst_40 = arith.constant 1.000000e+00 : f32
    %113 = vector.broadcast %cst_40 : f32 to vector<16x384xf32>
    %114 = arith.addf %113, %112 : vector<16x384xf32>
    %115 = arith.divf %113, %114 : vector<16x384xf32>
    %116 = vector.extract_strided_slice %115 {offsets = [0, 0], sizes = [16, 128], strides = [1, 1]} : vector<16x384xf32> to vector<16x128xf32>
    %117 = vector.extract_strided_slice %115 {offsets = [0, 128], sizes = [16, 128], strides = [1, 1]} : vector<16x384xf32> to vector<16x128xf32>
    %118 = vector.extract_strided_slice %115 {offsets = [0, 256], sizes = [16, 128], strides = [1, 1]} : vector<16x384xf32> to vector<16x128xf32>
    %119 = vector.extract_strided_slice %109 {offsets = [0, 384], sizes = [16, 128], strides = [1, 1]} : vector<16x512xf32> to vector<16x128xf32>
    %120 = math.tanh %119 : vector<16x128xf32>
    %121 = arith.mulf %117, %100 : vector<16x128xf32>
    %122 = arith.mulf %116, %120 : vector<16x128xf32>
    %123 = arith.addf %121, %122 : vector<16x128xf32>
    %124 = math.tanh %123 : vector<16x128xf32>
    %125 = arith.mulf %118, %124 : vector<16x128xf32>
    %c5_i32 = arith.constant 5 : i32
    %126 = arith.index_cast %c5_i32 : i32 to index
    %c0_41 = arith.constant 0 : index
    %c0_42 = arith.constant 0 : index
    %127 = vector.load %arg7[%126, %c0_41, %c0_42] : memref<8x16x512xf32, #tpu.memory_space<vmem>>, vector<1x16x512xf32>
    %128 = vector.shape_cast %127 : vector<1x16x512xf32> to vector<16x512xf32>
    %129 = arith.truncf %125 : vector<16x128xf32> to vector<16x128xbf16>
    %c0_43 = arith.constant 0 : index
    %c0_44 = arith.constant 0 : index
    %130 = vector.load %arg2[%c0_43, %c0_44] : memref<128x512xbf16, #tpu.memory_space<vmem>>, vector<128x512xbf16>
    %cst_45 = arith.constant dense<0.000000e+00> : vector<16x512xf32>
    %131 = tpu.matmul %129, %130, %cst_45 {dimension_numbers = #tpu.dot_dimension_numbers<[1], [0], [0], [1], [0, 0, 1, 1], [], []>} : vector<16x128xbf16>, vector<128x512xbf16>, vector<16x512xf32> -> vector<16x512xf32>
    %132 = arith.addf %128, %131 : vector<16x512xf32>
    %133 = vector.extract_strided_slice %132 {offsets = [0, 0], sizes = [16, 384], strides = [1, 1]} : vector<16x512xf32> to vector<16x384xf32>
    %134 = arith.negf %133 : vector<16x384xf32>
    %135 = math.exp %134 : vector<16x384xf32>
    %cst_46 = arith.constant 1.000000e+00 : f32
    %136 = vector.broadcast %cst_46 : f32 to vector<16x384xf32>
    %137 = arith.addf %136, %135 : vector<16x384xf32>
    %138 = arith.divf %136, %137 : vector<16x384xf32>
    %139 = vector.extract_strided_slice %138 {offsets = [0, 0], sizes = [16, 128], strides = [1, 1]} : vector<16x384xf32> to vector<16x128xf32>
    %140 = vector.extract_strided_slice %138 {offsets = [0, 128], sizes = [16, 128], strides = [1, 1]} : vector<16x384xf32> to vector<16x128xf32>
    %141 = vector.extract_strided_slice %138 {offsets = [0, 256], sizes = [16, 128], strides = [1, 1]} : vector<16x384xf32> to vector<16x128xf32>
    %142 = vector.extract_strided_slice %132 {offsets = [0, 384], sizes = [16, 128], strides = [1, 1]} : vector<16x512xf32> to vector<16x128xf32>
    %143 = math.tanh %142 : vector<16x128xf32>
    %144 = arith.mulf %140, %123 : vector<16x128xf32>
    %145 = arith.mulf %139, %143 : vector<16x128xf32>
    %146 = arith.addf %144, %145 : vector<16x128xf32>
    %147 = math.tanh %146 : vector<16x128xf32>
    %148 = arith.mulf %141, %147 : vector<16x128xf32>
    %c6_i32 = arith.constant 6 : i32
    %149 = arith.index_cast %c6_i32 : i32 to index
    %c0_47 = arith.constant 0 : index
    %c0_48 = arith.constant 0 : index
    %150 = vector.load %arg7[%149, %c0_47, %c0_48] : memref<8x16x512xf32, #tpu.memory_space<vmem>>, vector<1x16x512xf32>
    %151 = vector.shape_cast %150 : vector<1x16x512xf32> to vector<16x512xf32>
    %152 = arith.truncf %148 : vector<16x128xf32> to vector<16x128xbf16>
    %c0_49 = arith.constant 0 : index
    %c0_50 = arith.constant 0 : index
    %153 = vector.load %arg2[%c0_49, %c0_50] : memref<128x512xbf16, #tpu.memory_space<vmem>>, vector<128x512xbf16>
    %cst_51 = arith.constant dense<0.000000e+00> : vector<16x512xf32>
    %154 = tpu.matmul %152, %153, %cst_51 {dimension_numbers = #tpu.dot_dimension_numbers<[1], [0], [0], [1], [0, 0, 1, 1], [], []>} : vector<16x128xbf16>, vector<128x512xbf16>, vector<16x512xf32> -> vector<16x512xf32>
    %155 = arith.addf %151, %154 : vector<16x512xf32>
    %156 = vector.extract_strided_slice %155 {offsets = [0, 0], sizes = [16, 384], strides = [1, 1]} : vector<16x512xf32> to vector<16x384xf32>
    %157 = arith.negf %156 : vector<16x384xf32>
    %158 = math.exp %157 : vector<16x384xf32>
    %cst_52 = arith.constant 1.000000e+00 : f32
    %159 = vector.broadcast %cst_52 : f32 to vector<16x384xf32>
    %160 = arith.addf %159, %158 : vector<16x384xf32>
    %161 = arith.divf %159, %160 : vector<16x384xf32>
    %162 = vector.extract_strided_slice %161 {offsets = [0, 0], sizes = [16, 128], strides = [1, 1]} : vector<16x384xf32> to vector<16x128xf32>
    %163 = vector.extract_strided_slice %161 {offsets = [0, 128], sizes = [16, 128], strides = [1, 1]} : vector<16x384xf32> to vector<16x128xf32>
    %164 = vector.extract_strided_slice %161 {offsets = [0, 256], sizes = [16, 128], strides = [1, 1]} : vector<16x384xf32> to vector<16x128xf32>
    %165 = vector.extract_strided_slice %155 {offsets = [0, 384], sizes = [16, 128], strides = [1, 1]} : vector<16x512xf32> to vector<16x128xf32>
    %166 = math.tanh %165 : vector<16x128xf32>
    %167 = arith.mulf %163, %146 : vector<16x128xf32>
    %168 = arith.mulf %162, %166 : vector<16x128xf32>
    %169 = arith.addf %167, %168 : vector<16x128xf32>
    %170 = math.tanh %169 : vector<16x128xf32>
    %171 = arith.mulf %164, %170 : vector<16x128xf32>
    %c7_i32 = arith.constant 7 : i32
    %172 = arith.index_cast %c7_i32 : i32 to index
    %c0_53 = arith.constant 0 : index
    %c0_54 = arith.constant 0 : index
    %173 = vector.load %arg7[%172, %c0_53, %c0_54] : memref<8x16x512xf32, #tpu.memory_space<vmem>>, vector<1x16x512xf32>
    %174 = vector.shape_cast %173 : vector<1x16x512xf32> to vector<16x512xf32>
    %175 = arith.truncf %171 : vector<16x128xf32> to vector<16x128xbf16>
    %c0_55 = arith.constant 0 : index
    %c0_56 = arith.constant 0 : index
    %176 = vector.load %arg2[%c0_55, %c0_56] : memref<128x512xbf16, #tpu.memory_space<vmem>>, vector<128x512xbf16>
    %cst_57 = arith.constant dense<0.000000e+00> : vector<16x512xf32>
    %177 = tpu.matmul %175, %176, %cst_57 {dimension_numbers = #tpu.dot_dimension_numbers<[1], [0], [0], [1], [0, 0, 1, 1], [], []>} : vector<16x128xbf16>, vector<128x512xbf16>, vector<16x512xf32> -> vector<16x512xf32>
    %178 = arith.addf %174, %177 : vector<16x512xf32>
    %179 = vector.extract_strided_slice %178 {offsets = [0, 0], sizes = [16, 384], strides = [1, 1]} : vector<16x512xf32> to vector<16x384xf32>
    %180 = arith.negf %179 : vector<16x384xf32>
    %181 = math.exp %180 : vector<16x384xf32>
    %cst_58 = arith.constant 1.000000e+00 : f32
    %182 = vector.broadcast %cst_58 : f32 to vector<16x384xf32>
    %183 = arith.addf %182, %181 : vector<16x384xf32>
    %184 = arith.divf %182, %183 : vector<16x384xf32>
    %185 = vector.extract_strided_slice %184 {offsets = [0, 0], sizes = [16, 128], strides = [1, 1]} : vector<16x384xf32> to vector<16x128xf32>
    %186 = vector.extract_strided_slice %184 {offsets = [0, 128], sizes = [16, 128], strides = [1, 1]} : vector<16x384xf32> to vector<16x128xf32>
    %187 = vector.extract_strided_slice %184 {offsets = [0, 256], sizes = [16, 128], strides = [1, 1]} : vector<16x384xf32> to vector<16x128xf32>
    %188 = vector.extract_strided_slice %178 {offsets = [0, 384], sizes = [16, 128], strides = [1, 1]} : vector<16x512xf32> to vector<16x128xf32>
    %189 = math.tanh %188 : vector<16x128xf32>
    %190 = arith.mulf %186, %169 : vector<16x128xf32>
    %191 = arith.mulf %185, %189 : vector<16x128xf32>
    %192 = arith.addf %190, %191 : vector<16x128xf32>
    %193 = math.tanh %192 : vector<16x128xf32>
    %194 = arith.mulf %187, %193 : vector<16x128xf32>
    %c8_i32 = arith.constant 8 : i32
    %195 = arith.truncf %194 : vector<16x128xf32> to vector<16x128xbf16>
    %c0_59 = arith.constant 0 : index
    %c0_60 = arith.constant 0 : index
    %196 = vector.load %arg4[%c0_59, %c0_60] : memref<128x128xbf16, #tpu.memory_space<vmem>>, vector<128x128xbf16>
    %cst_61 = arith.constant dense<0.000000e+00> : vector<16x128xf32>
    %197 = tpu.matmul %195, %196, %cst_61 {dimension_numbers = #tpu.dot_dimension_numbers<[1], [0], [0], [1], [0, 0, 1, 1], [], []>} : vector<16x128xbf16>, vector<128x128xbf16>, vector<16x128xf32> -> vector<16x128xf32>
    %c0_62 = arith.constant 0 : index
    %c0_63 = arith.constant 0 : index
    %198 = vector.load %arg5[%c0_62, %c0_63] : memref<1x128xf32, #tpu.memory_space<vmem>>, vector<1x128xf32>
    %199 = vector.broadcast %198 : vector<1x128xf32> to vector<16x128xf32>
    %200 = arith.addf %197, %199 : vector<16x128xf32>
    %c0_64 = arith.constant 0 : index
    %c0_65 = arith.constant 0 : index
    %201 = vector.load %arg6[%c0_64, %c0_65] : memref<16x128xf32, #tpu.memory_space<vmem>>, vector<16x128xf32>
    tpu.vector_store %arg6[%c0_64, %c0_65], %200 {strides = array<i32>} : memref<16x128xf32, #tpu.memory_space<vmem>>, vector<16x128xf32>,
    return
  }
}

</mosaic_0001>

<bundles_post_ra>
// kernel: tpu_custom_call.1
= control target key start
LH: loop header
LB: loop body
LE: loop exit
PB: predicated region body
PF: predicated region fallthrough
CT: control target
= control target key end

     0   :  { %11 = vsyncpa [#allocation4], 0  ;;  %s3686_s0 = inlined_call_operand.hbm [shape: bf16[8,16,128], index: 0, kind: input, shape index: {}]   ;;  %s3687_s1 = inlined_call_operand.hbm [shape: bf16[128,512], index: 1, kind: input, shape index: {}]   ;;  %s3688_s2 = inlined_call_operand.hbm [shape: bf16[128,512], index: 2, kind: input, shape index: {}]   ;;  %s3689_s3 = inlined_call_operand.vmem [shape: f32[1,512], index: 3, kind: input, shape index: {}]   ;;  %s3690_s4 = inlined_call_operand.hbm [shape: bf16[128,128], index: 4, kind: input, shape index: {}]   ;;  %s3691_s5 = inlined_call_operand.vmem [shape: f32[1,128], index: 5, kind: input, shape index: {}]   ;;  %s3692_s6 = inlined_call_operand.hbm [shape: f32[16,128], index: 6, kind: output, shape index: {}]  }
   0x1   :  { %12 = vsyncpa [#allocation7], 0 }
   0x2   :  { %13 = vsyncpa [#allocation10], 0 }
   0x3   :  { %14 = vsyncpa [#allocation5], 0  ;;  %s3006_s21 = smov [#allocation6]   ;;  %s2888_s25 = scalar_lea.hbm %s3687_s1, 4096 }
   0x4   :  { %s32_s22 = sshll.u32 %s3006_s21, 4  ;;  %p2889_p0 = scmp.ne.s32.totalorder %s3687_s1, %s2888_s25  ;;  %s33_s22 = int_to_ptr.vmem [resolvable:$true] %s32_s22 }
   0x5   :  { %p2892_p1 = scmp.lt.u32.totalorder %s2888_s25, %s3687_s1 }
   0x7   :  { %p2894_p2 = pnand %p2892_p1, %p2889_p0 }
   0x9   :  { %2897 = shalt.err (!%p2894_p2)
}
   0xa   :  { %s2898_s30 = scalar_lea.vmem %s33_s22, 4096  ;;  %p2903_p4 = scmp.lt.s32.totalorder %s33_s22, %s33_s22 }
   0xb   :  { %p2899_p3 = scmp.ne.s32.totalorder %s33_s22, %s2898_s30  ;;  %p2904_p5 = scmp.lt.s32.totalorder %s2898_s30, %s2898_s30 }
   0xd   :  { %p2905_p6 = por %p2904_p5, %p2903_p4 }
   0xf   :  { %p2906_p7 = pnand %p2905_p6, %p2899_p3 }
  0x11   :  { %2909 = shalt.err (!%p2906_p7)
}
  0x12   :  { %s3007_s7 = smov 256   ;;  %s3008_s8 = smov 16  }
  0x13   :  { %38 = dma.hbm_to_vmem [thread:$0]  %s3687_s1, 4096, %s33_s22, [#allocation7], %s3007_s7, %s3007_s7, %s3008_s8  }
  0x14   :  { %s3009_s11 = smov [#allocation3]   ;;  %s2910_s15 = scalar_lea.hbm %s3686_s0, 1024 }
  0x15   :  { %s20_s12 = sshll.u32 %s3009_s11, 4  ;;  %p2911_p8 = scmp.ne.s32.totalorder %s3686_s0, %s2910_s15  ;;  %s21_s12 = int_to_ptr.vmem [resolvable:$true] %s20_s12 }
  0x16   :  { %p2914_p9 = scmp.lt.u32.totalorder %s2910_s15, %s3686_s0 }
  0x18   :  { %p2916_p10 = pnand %p2914_p9, %p2911_p8 }
  0x1a   :  { %2919 = shalt.err (!%p2916_p10)
}
  0x1b   :  { %s2920_s20 = scalar_lea.vmem %s21_s12, 1024  ;;  %p2925_p12 = scmp.lt.s32.totalorder %s21_s12, %s21_s12 }
  0x1c   :  { %p2921_p11 = scmp.ne.s32.totalorder %s21_s12, %s2920_s20  ;;  %p2926_p13 = scmp.lt.s32.totalorder %s2920_s20, %s2920_s20 }
  0x1e   :  { %p2927_p0 = por %p2926_p13, %p2925_p12 }
  0x20   :  { %p2928_p1 = pnand %p2927_p0, %p2921_p11 }
  0x22   :  { %2931 = shalt.err (!%p2928_p1)
}
  0x23   :  { %s3010_s1 = smov 64   ;;  %s3011_s21 = smov 4  }
  0x24   :  { %26 = dma.hbm_to_vmem [thread:$0]  %s3686_s0, 1024, %s21_s12, [#allocation4], %s3010_s1, %s3010_s1, %s3011_s21  }
  0x25   :  { %s3012_s24 = smov [#allocation8]   ;;  %s3013_s26 = smov [#allocation9]  }
  0x26   :  { %s44_s25 = sshll.u32 %s3012_s24, 4  ;;  %s58_s27 = sshll.u32 %s3013_s26, 4  ;;  %s45_s25 = int_to_ptr.vmem [resolvable:$true] %s44_s25  ;;  %s3085_s27 = int_to_ptr.vmem [resolvable:$true] %s58_s27 }
  0x27   :  { %s2932_s30 = scalar_lea.hbm %s3688_s2, 4096 }
  0x28   :  { %p2933_p2 = scmp.ne.s32.totalorder %s3688_s2, %s2932_s30  ;;  %p2936_p3 = scmp.lt.u32.totalorder %s2932_s30, %s3688_s2 }
  0x2a   :  { %p2938_p4 = pnand %p2936_p3, %p2933_p2 }
  0x2c   :  { %2941 = shalt.err (!%p2938_p4)
}
  0x2d   :  { %s2942_s0 = scalar_lea.vmem %s45_s25, 4096  ;;  %p2947_p6 = scmp.lt.s32.totalorder %s45_s25, %s45_s25 }
  0x2e   :  { %p2943_p5 = scmp.ne.s32.totalorder %s45_s25, %s2942_s0  ;;  %p2948_p7 = scmp.lt.s32.totalorder %s2942_s0, %s2942_s0 }
  0x30   :  { %p2949_p8 = por %p2948_p7, %p2947_p6 }
  0x32   :  { %p2950_p9 = pnand %p2949_p8, %p2943_p5 }
  0x34   :  { %2953 = shalt.err (!%p2950_p9)
}
  0x35   :  { %50 = dma.hbm_to_vmem [thread:$0]  %s3688_s2, 4096, %s45_s25, [#allocation7], %s3007_s7, %s3007_s7, %s3008_s8  }
  0x36   :  { %s2954_s17 = scalar_lea.hbm %s3690_s4, 1024 }
  0x37   :  { %p2955_p10 = scmp.ne.s32.totalorder %s3690_s4, %s2954_s17  ;;  %p2958_p11 = scmp.lt.u32.totalorder %s2954_s17, %s3690_s4 }
  0x39   :  { %p2960_p12 = pnand %p2958_p11, %p2955_p10 }
  0x3b   :  { %2963 = shalt.err (!%p2960_p12)
}
  0x3c   :  { %s2964_s23 = scalar_lea.vmem %s3085_s27, 1024  ;;  %p2969_p0 = scmp.lt.s32.totalorder %s3085_s27, %s3085_s27 }
  0x3d   :  { %p2965_p13 = scmp.ne.s32.totalorder %s3085_s27, %s2964_s23  ;;  %p2970_p1 = scmp.lt.s32.totalorder %s2964_s23, %s2964_s23 }
  0x3f   :  { %p2971_p2 = por %p2970_p1, %p2969_p0 }
  0x41   :  { %p2972_p3 = pnand %p2971_p2, %p2965_p13 }
  0x43   :  { %2975 = shalt.err (!%p2972_p3)
}
  0x44   :  { %64 = dma.hbm_to_vmem [thread:$0]  %s3690_s4, 1024, %s3085_s27, [#allocation10], %s3010_s1, %s3010_s1, %s3011_s21  }
  0x45   :  { %2998 = dma.done.wait [#allocation4], 1024  }
  0x46   :  { %2999 = vsyncadd [#allocation4], 4294966272 }
  0x47   :  { %3000 = dma.done.wait [#allocation7], 8192  }
  0x48   :  { %3001 = vsyncadd [#allocation7], 4294959104 }
  0x49   :  { %3002 = dma.done.wait [#allocation10], 1024  }
  0x4a   :  { %3003 = vsyncadd [#allocation10], 4294966272  ;;  %v3014_v0 = vmov 0   ;;  %v2488_v1 = vld [vmem:[#allocation6 + $0x4] ss:$16 sps:$4 sm:$0xff]   ;;  %v2540_v43 = vld [vmem:[#allocation3 + $0x8] sm:$0xff]  }
  0x4b   :  { %390 = vmatprep.mubr.bf16.mxu0 %v3014_v0  ;;  %503 = vmatprep.mubr.bf16.mxu1 %v3014_v0  ;;  %v2490_v2 = vld [vmem:[#allocation6 + $0xc] ss:$16 sps:$4 sm:$0xff]   ;;  %v2492_v3 = vld [vmem:[#allocation6] ss:$16 sps:$4 sm:$0xff]   ;;  %v2493_v4 = vld [vmem:[#allocation6 + $0x8] ss:$16 sps:$4 sm:$0xff]  }
  0x4c   :  { %358 = vmatprep.subr.bf16.mxu0 %v2488_v1  ;;  %471 = vmatprep.subr.bf16.mxu1 %v2490_v2  ;;  %v2494_v5 = vld [vmem:[#allocation6 + $0x24] ss:$16 sps:$4 sm:$0xff]   ;;  %v2496_v6 = vld [vmem:[#allocation6 + $0x2c] ss:$16 sps:$4 sm:$0xff]   ;;  %v2498_v7 = vld [vmem:[#allocation6 + $0x20] ss:$16 sps:$4 sm:$0xff]  }
  0x4d   :  { %359 = vmatpush1.bf16.msra.mxu0 %v2492_v3  ;;  %472 = vmatpush1.bf16.msra.mxu1 %v2493_v4  ;;  %v2499_v8 = vld [vmem:[#allocation6 + $0x28] ss:$16 sps:$4 sm:$0xff]   ;;  %v2500_v9 = vld [vmem:[#allocation6 + $0x44] ss:$16 sps:$4 sm:$0xff]   ;;  %v2502_v10 = vld [vmem:[#allocation6 + $0x4c] ss:$16 sps:$4 sm:$0xff]  }
  0x4e   :  { %360 = vmatprep.subr.bf16.mxu0 %v2494_v5  ;;  %473 = vmatprep.subr.bf16.mxu1 %v2496_v6  ;;  %v2504_v11 = vld [vmem:[#allocation6 + $0x40] ss:$16 sps:$4 sm:$0xff]   ;;  %v2505_v12 = vld [vmem:[#allocation6 + $0x48] ss:$16 sps:$4 sm:$0xff]   ;;  %v2506_v13 = vld [vmem:[#allocation6 + $0x64] ss:$16 sps:$4 sm:$0xff]  }
  0x4f   :  { %v2508_v14 = vld [vmem:[#allocation6 + $0x6c] ss:$16 sps:$4 sm:$0xff]   ;;  %v2510_v15 = vld [vmem:[#allocation6 + $0x60] ss:$16 sps:$4 sm:$0xff]   ;;  %v2511_v16 = vld [vmem:[#allocation6 + $0x68] ss:$16 sps:$4 sm:$0xff]  }
  0x50   :  { %v2512_v17 = vld [vmem:[#allocation6 + $0x84] ss:$16 sps:$4 sm:$0xff]   ;;  %v2514_v18 = vld [vmem:[#allocation6 + $0x8c] ss:$16 sps:$4 sm:$0xff]   ;;  %v2516_v19 = vld [vmem:[#allocation6 + $0x80] ss:$16 sps:$4 sm:$0xff]  }
  0x51   :  { %361 = vmatpush1.bf16.msra.mxu0 %v2498_v7  ;;  %474 = vmatpush1.bf16.msra.mxu1 %v2499_v8  ;;  %v2517_v20 = vld [vmem:[#allocation6 + $0x88] ss:$16 sps:$4 sm:$0xff]   ;;  %v2518_v21 = vld [vmem:[#allocation6 + $0xa4] ss:$16 sps:$4 sm:$0xff]   ;;  %v2520_v22 = vld [vmem:[#allocation6 + $0xac] ss:$16 sps:$4 sm:$0xff]  }
  0x52   :  { %362 = vmatprep.subr.bf16.mxu0 %v2500_v9  ;;  %475 = vmatprep.subr.bf16.mxu1 %v2502_v10  ;;  %v2522_v23 = vld [vmem:[#allocation6 + $0xa0] ss:$16 sps:$4 sm:$0xff]   ;;  %v2523_v24 = vld [vmem:[#allocation6 + $0xa8] ss:$16 sps:$4 sm:$0xff]   ;;  %v2524_v25 = vld [vmem:[#allocation6 + $0xc4] ss:$16 sps:$4 sm:$0xff]   ;;  %v130_v10 = vlaneseq }
  0x53   :  { %v2526_v26 = vld [vmem:[#allocation6 + $0xcc] ss:$16 sps:$4 sm:$0xff]   ;;  %v2528_v27 = vld [vmem:[#allocation6 + $0xc0] ss:$16 sps:$4 sm:$0xff]   ;;  %v2529_v28 = vld [vmem:[#allocation6 + $0xc8] ss:$16 sps:$4 sm:$0xff]  }
  0x54   :  { %v2530_v29 = vld [vmem:[#allocation6 + $0xe4] ss:$16 sps:$4 sm:$0xff]   ;;  %v2532_v30 = vld [vmem:[#allocation6 + $0xec] ss:$16 sps:$4 sm:$0xff]   ;;  %v2534_v31 = vld [vmem:[#allocation6 + $0xe0] ss:$16 sps:$4 sm:$0xff]  }
  0x55   :  { %363 = vmatpush1.bf16.msra.mxu0 %v2504_v11  ;;  %476 = vmatpush1.bf16.msra.mxu1 %v2505_v12  ;;  %v2535_v32 = vld [vmem:[#allocation6 + $0xe8] ss:$16 sps:$4 sm:$0xff]   ;;  %v3124_v33 = vld [vmem:[#allocation8 + $0x4] ss:$16 sps:$4 sm:$0xff]   ;;  %v3126_v34 = vld [vmem:[#allocation8 + $0xc] ss:$16 sps:$4 sm:$0xff]  }
  0x56   :  { %364 = vmatprep.subr.bf16.mxu0 %v2506_v13  ;;  %477 = vmatprep.subr.bf16.mxu1 %v2508_v14  ;;  %v2536_v35 = vld [vmem:[#allocation3] sm:$0xff]   ;;  %v3134_v38 = vld [vmem:[#allocation8 + $0x8] ss:$16 sps:$4 sm:$0xff]   ;;  %v3136_v39 = vld [vmem:[#allocation8 + $0x2c] ss:$16 sps:$4 sm:$0xff]   ;;  %v131_v11 = vshrl.u32 %v130_v10, 7 }
  0x57   :  { %v3128_v36 = vld [vmem:[#allocation8] ss:$16 sps:$4 sm:$0xff]   ;;  %v3131_v37 = vld [vmem:[#allocation8 + $0x24] ss:$16 sps:$4 sm:$0xff]   ;;  %v3147_v42 = vld [vmem:[#allocation8 + $0x28] ss:$16 sps:$4 sm:$0xff]  }
  0x58   :  { %v3140_v40 = vld [vmem:[#allocation8 + $0x20] ss:$16 sps:$4 sm:$0xff]   ;;  %v3144_v41 = vld [vmem:[#allocation8 + $0x44] ss:$16 sps:$4 sm:$0xff]   ;;  %v3156_v46 = vld [vmem:[#allocation8 + $0x4c] ss:$16 sps:$4 sm:$0xff]  }
  0x59   :  { %365 = vmatpush1.bf16.msra.mxu0 %v2510_v15  ;;  %478 = vmatpush1.bf16.msra.mxu1 %v2511_v16  ;;  %v3151_v44 = vld [vmem:[#allocation8 + $0x40] ss:$16 sps:$4 sm:$0xff]   ;;  %v3153_v45 = vld [vmem:[#allocation8 + $0x64] ss:$16 sps:$4 sm:$0xff]   ;;  %v3159_v47 = vld [vmem:[#allocation8 + $0x48] ss:$16 sps:$4 sm:$0xff]  }
  0x5a   :  { %366 = vmatprep.subr.bf16.mxu0 %v2512_v17  ;;  %479 = vmatprep.subr.bf16.mxu1 %v2514_v18  ;;  %v3161_v48 = vld [vmem:[#allocation8 + $0x6c] ss:$16 sps:$4 sm:$0xff]   ;;  %v3166_v49 = vld [vmem:[#allocation8 + $0x60] ss:$16 sps:$4 sm:$0xff]   ;;  %v3169_v50 = vld [vmem:[#allocation8 + $0x84] ss:$16 sps:$4 sm:$0xff]  }
  0x5b   :  { %v3173_v51 = vld [vmem:[#allocation8 + $0x68] ss:$16 sps:$4 sm:$0xff]   ;;  %v2546_v52 = vld [vmem:[#allocation3 + $0x10] sm:$0xff]   ;;  %v3179_v54 = vld [vmem:[#allocation8 + $0x8c] ss:$16 sps:$4 sm:$0xff]   ;;  %v132_v12 = vsub.s32 0, %v131_v11 }
  0x5c   :  { %v3176_v53 = vld [vmem:[#allocation8 + $0x80] ss:$16 sps:$4 sm:$0xff]   ;;  %v3182_v55 = vld [vmem:[#allocation8 + $0xa4] ss:$16 sps:$4 sm:$0xff]   ;;  %v3185_v56 = vld [vmem:[#allocation8 + $0x88] ss:$16 sps:$4 sm:$0xff]  }
  0x5d   :  { %367 = vmatpush1.bf16.msra.mxu0 %v2516_v19  ;;  %480 = vmatpush1.bf16.msra.mxu1 %v2517_v20  ;;  %v3187_v57 = vld [vmem:[#allocation8 + $0xac] ss:$16 sps:$4 sm:$0xff]   ;;  %v3189_v58 = vld [vmem:[#allocation8 + $0xa0] ss:$16 sps:$4 sm:$0xff]   ;;  %v3193_v59 = vld [vmem:[#allocation8 + $0xc4] ss:$16 sps:$4 sm:$0xff]  }
  0x5e   :  { %368 = vmatprep.subr.bf16.mxu0 %v2518_v21  ;;  %481 = vmatprep.subr.bf16.mxu1 %v2520_v22  ;;  %v3195_v60 = vld [vmem:[#allocation8 + $0xa8] ss:$16 sps:$4 sm:$0xff]   ;;  %v3203_v62 = vld [vmem:[#allocation8 + $0xc0] ss:$16 sps:$4 sm:$0xff]   ;;  %v3205_v63 = vld [vmem:[#allocation8 + $0xcc] ss:$16 sps:$4 sm:$0xff]  }
  0x5f   :  { %v2553_v61 = vld [vmem:[#allocation3 + $0x18] sm:$0xff]   ;;  %v3209_v1 = vld [vmem:[#allocation8 + $0xe4] ss:$16 sps:$4 sm:$0xff]   ;;  %v3219_v4 = vld [vmem:[#allocation8 + $0xe0] ss:$16 sps:$4 sm:$0xff]   ;;  %v136_v14 = vsub.s32 1, %v131_v11 }
  0x60   :  { %v3211_v2 = vld [vmem:[#allocation8 + $0xc8] ss:$16 sps:$4 sm:$0xff]   ;;  %v3213_v3 = vld [vmem:[#allocation8 + $0xec] ss:$16 sps:$4 sm:$0xff]   ;;  %v2560_v6 = vld [vmem:[#allocation3 + $0x20] sm:$0xff]   ;;  %v140_v18 = vsub.s32 2, %v131_v11 }
  0x61   :  { %369 = vmatpush1.bf16.msra.mxu0 %v2522_v23  ;;  %482 = vmatpush1.bf16.msra.mxu1 %v2523_v24  ;;  %v3223_v5 = vld [vmem:[#allocation8 + $0xe8] ss:$16 sps:$4 sm:$0xff]   ;;  %v2574_v8 = vld [vmem:[#allocation3 + $0x30] sm:$0xff]   ;;  %v128_v13 = vld [vmem:[%s3689_s3] sm:$0xf]  ;;  %vm3016_vm0 = vmmov 0  }
  0x62   :  { %370 = vmatprep.subr.bf16.mxu0 %v2524_v25  ;;  %483 = vmatprep.subr.bf16.mxu1 %v2526_v26  ;;  %v2567_v7 = vld [vmem:[#allocation3 + $0x28] sm:$0xff]   ;;  %v2582_v9 = vld [vmem:[#allocation3 + $0x38] sm:$0xff]   ;;  %v3277_v15 = vrot.slane %v128_v13, %v132_v12  ;;  %v3279_v16 = vrot.slane %v128_v13, %v136_v14  ;;  %s3017_s21 = smov [#allocation11]  }
  0x63   :  { %s2174_s24 = sshll.u32 %s3017_s21, 4  ;;  %s2175_s24 = int_to_ptr.vmem [resolvable:$true] %s2174_s24 }
  0x64   :  { %s2976_s25 = scalar_lea.vmem %s2175_s24, 256  ;;  %p2981_p5 = scmp.lt.s32.totalorder %s2175_s24, %s2175_s24 }
  0x65   :  { %371 = vmatpush1.bf16.msra.mxu0 %v2528_v27  ;;  %484 = vmatpush1.bf16.msra.mxu1 %v2529_v28  ;;  %v144_v27 = vsub.s32 3, %v131_v11  ;;  %p2977_p4 = scmp.ne.s32.totalorder %s2175_s24, %s2976_s25  ;;  %p2982_p6 = scmp.lt.s32.totalorder %s2976_s25, %s2976_s25 }
  0x66   :  { %372 = vmatprep.subr.bf16.mxu0 %v2530_v29  ;;  %485 = vmatprep.subr.bf16.mxu1 %v2532_v30 }
  0x67   :  { %p2983_p7 = por %p2982_p6, %p2981_p5 }
  0x69   :  { %373 = vmatpush1.bf16.msra.mxu0 %v2534_v31  ;;  %486 = vmatpush1.bf16.msra.mxu1 %v2535_v32  ;;  %v3284_v31 = vrot.slane %v128_v13, %v140_v18  ;;  %p2984_p8 = pnand %p2983_p7, %p2977_p4 }
  0x6a   :  { %848 = vmatprep.subr.bf16.mxu0 %v3124_v33  ;;  %891 = vmatprep.subr.bf16.mxu1 %v3126_v34 }
  0x6c   :  { %391 = vmatmul.mubr.bf16.vlgmr.msra.gmra.mrb[0].mxu0 %v2536_v35  ;;  %504 = vmatmul.mubr.bf16.vlgmr.msra.gmra.mrb[0].mxu1 %v2536_v35 }
  0x6d   :  { %849 = vmatpush1.bf16.msra.mxu0 %v3128_v36  ;;  %400 = vmatprep.mubr.bf16.mxu0 %v3014_v0 }
  0x6e   :  { %513 = vmatprep.mubr.bf16.mxu1 %v3014_v0  ;;  %850 = vmatprep.subr.bf16.mxu0 %v3131_v37 }
  0x6f   :  { %892 = vmatpush1.bf16.msra.mxu1 %v3134_v38 }
  0x70   :  { %893 = vmatprep.subr.bf16.mxu1 %v3136_v39 }
  0x71   :  { %851 = vmatpush1.bf16.msra.mxu0 %v3140_v40 }
  0x72   :  { %852 = vmatprep.subr.bf16.mxu0 %v3144_v41 }
  0x73   :  { %894 = vmatpush1.bf16.msra.mxu1 %v3147_v42 }
  0x74   :  { %401 = vmatmul.mubr.bf16.gmra.mrb[4].mxu0 %v2540_v43  ;;  %514 = vmatmul.mubr.bf16.gmra.mrb[4].mxu1 %v2540_v43 }
  0x75   :  { %410 = vmatprep.mubr.bf16.mxu0 %v3014_v0  ;;  %523 = vmatprep.mubr.bf16.mxu1 %v3014_v0 }
  0x76   :  { %853 = vmatpush1.bf16.msra.mxu0 %v3151_v44  ;;  %895 = vmatprep.subr.bf16.mxu1 %v3156_v46 }
  0x77   :  { %854 = vmatprep.subr.bf16.mxu0 %v3153_v45  ;;  %896 = vmatpush1.bf16.msra.mxu1 %v3159_v47 }
  0x78   :  { %897 = vmatprep.subr.bf16.mxu1 %v3161_v48 }
  0x7a   :  { %855 = vmatpush1.bf16.msra.mxu0 %v3166_v49 }
  0x7b   :  { %856 = vmatprep.subr.bf16.mxu0 %v3169_v50  ;;  %898 = vmatpush1.bf16.msra.mxu1 %v3173_v51 }
  0x7c   :  { %411 = vmatmul.mubr.bf16.gmra.mrb[8].mxu0 %v2546_v52  ;;  %524 = vmatmul.mubr.bf16.gmra.mrb[8].mxu1 %v2546_v52 }
  0x7d   :  { %420 = vmatprep.mubr.bf16.mxu0 %v3014_v0  ;;  %533 = vmatprep.mubr.bf16.mxu1 %v3014_v0 }
  0x7e   :  { %857 = vmatpush1.bf16.msra.mxu0 %v3176_v53  ;;  %899 = vmatprep.subr.bf16.mxu1 %v3179_v54 }
  0x7f   :  { %858 = vmatprep.subr.bf16.mxu0 %v3182_v55  ;;  %900 = vmatpush1.bf16.msra.mxu1 %v3185_v56 }
  0x80   :  { %901 = vmatprep.subr.bf16.mxu1 %v3187_v57 }
  0x82   :  { %859 = vmatpush1.bf16.msra.mxu0 %v3189_v58 }
  0x83   :  { %860 = vmatprep.subr.bf16.mxu0 %v3193_v59  ;;  %902 = vmatpush1.bf16.msra.mxu1 %v3195_v60 }
  0x84   :  { %421 = vmatmul.mubr.bf16.gmra.mrb[12].mxu0 %v2553_v61  ;;  %534 = vmatmul.mubr.bf16.gmra.mrb[12].mxu1 %v2553_v61  ;;  %v3287_v61 = vrot.slane %v128_v13, %v144_v27 }
  0x85   :  { %430 = vmatprep.mubr.bf16.mxu0 %v3014_v0  ;;  %543 = vmatprep.mubr.bf16.mxu1 %v3014_v0 }
  0x86   :  { %861 = vmatpush1.bf16.msra.mxu0 %v3203_v62  ;;  %903 = vmatprep.subr.bf16.mxu1 %v3205_v63 }
  0x87   :  { %862 = vmatprep.subr.bf16.mxu0 %v3209_v1  ;;  %904 = vmatpush1.bf16.msra.mxu1 %v3211_v2 }
  0x88   :  { %905 = vmatprep.subr.bf16.mxu1 %v3213_v3 }
  0x8a   :  { %863 = vmatpush1.bf16.msra.mxu0 %v3219_v4 }
  0x8b   :  { %906 = vmatpush1.bf16.msra.mxu1 %v3223_v5  ;;  %1000 = vmatprep.subr.bf16.mxu0 %v3124_v33 }
  0x8c   :  { %431 = vmatmul.mubr.bf16.gmra.mrb[16].mxu0 %v2560_v6  ;;  %544 = vmatmul.mubr.bf16.gmra.mrb[16].mxu1 %v2560_v6 }
  0x8d   :  { %440 = vmatprep.mubr.bf16.mxu0 %v3014_v0  ;;  %553 = vmatprep.mubr.bf16.mxu1 %v3014_v0 }
  0x8e   :  { %1043 = vmatprep.subr.bf16.mxu1 %v3126_v34 }
  0x94   :  { %441 = vmatmul.mubr.bf16.gmra.mrb[20].mxu0 %v2567_v7  ;;  %554 = vmatmul.mubr.bf16.gmra.mrb[20].mxu1 %v2567_v7 }
  0x95   :  { %450 = vmatprep.mubr.bf16.mxu0 %v3014_v0  ;;  %563 = vmatprep.mubr.bf16.mxu1 %v3014_v0 }
  0x9c   :  { %451 = vmatmul.mubr.bf16.gmra.mrb[24].mxu0 %v2574_v8  ;;  %564 = vmatmul.mubr.bf16.gmra.mrb[24].mxu1 %v2574_v8 }
  0x9d   :  { %460 = vmatprep.mubr.bf16.mxu0 %v3014_v0  ;;  %573 = vmatprep.mubr.bf16.mxu1 %v3014_v0 }
  0xa4   :  { %461 = vmatmul.mubr.bf16.gmra.mrb[28].mxu0 %v2582_v9  ;;  %574 = vmatmul.mubr.bf16.gmra.mrb[28].mxu1 %v2582_v9 }
  0xa5   :  { %880 = vmatprep.mubr.bf16.mxu0 %v3014_v0  ;;  %923 = vmatprep.mubr.bf16.mxu1 %v3014_v0 }
  0xac   :  { %881 = vmatmul.mubr.bf16.vlgmr.msra.gmra.mrb[0].mxu0 %v3014_v0  ;;  %924 = vmatmul.mubr.bf16.vlgmr.msra.gmra.mrb[0].mxu1 %v3014_v0 }
  0xad   :  { %1001 = vmatpush1.bf16.msra.mxu0 %v3128_v36  ;;  %1044 = vmatpush1.bf16.msra.mxu1 %v3134_v38 }
  0xae   :  { %1002 = vmatprep.subr.bf16.mxu0 %v3131_v37  ;;  %1045 = vmatprep.subr.bf16.mxu1 %v3136_v39 }
  0xaf   :  { %1032 = vmatprep.mubr.bf16.mxu0 %v3014_v0  ;;  %1075 = vmatprep.mubr.bf16.mxu1 %v3014_v0 }
  0xb1   :  { %1003 = vmatpush1.bf16.msra.mxu0 %v3140_v40  ;;  %1046 = vmatpush1.bf16.msra.mxu1 %v3147_v42 }
  0xb2   :  { %1004 = vmatprep.subr.bf16.mxu0 %v3144_v41  ;;  %1047 = vmatprep.subr.bf16.mxu1 %v3156_v46 }
  0xb5   :  { %1005 = vmatpush1.bf16.msra.mxu0 %v3151_v44  ;;  %1048 = vmatpush1.bf16.msra.mxu1 %v3159_v47 }
  0xb6   :  { %1006 = vmatprep.subr.bf16.mxu0 %v3153_v45  ;;  %1049 = vmatprep.subr.bf16.mxu1 %v3161_v48 }
  0xb9   :  { %1007 = vmatpush1.bf16.msra.mxu0 %v3166_v49  ;;  %1050 = vmatpush1.bf16.msra.mxu1 %v3173_v51 }
  0xba   :  { %1008 = vmatprep.subr.bf16.mxu0 %v3169_v50  ;;  %1051 = vmatprep.subr.bf16.mxu1 %v3179_v54 }
  0xbd   :  { %1009 = vmatpush1.bf16.msra.mxu0 %v3176_v53  ;;  %1052 = vmatpush1.bf16.msra.mxu1 %v3185_v56 }
  0xbe   :  { %1010 = vmatprep.subr.bf16.mxu0 %v3182_v55  ;;  %1053 = vmatprep.subr.bf16.mxu1 %v3187_v57 }
  0xc1   :  { %1011 = vmatpush1.bf16.msra.mxu0 %v3189_v58  ;;  %1054 = vmatpush1.bf16.msra.mxu1 %v3195_v60 }
  0xc2   :  { %1012 = vmatprep.subr.bf16.mxu0 %v3193_v59  ;;  %1055 = vmatprep.subr.bf16.mxu1 %v3205_v63 }
  0xc5   :  { %1013 = vmatpush1.bf16.msra.mxu0 %v3203_v62  ;;  %1056 = vmatpush1.bf16.msra.mxu1 %v3211_v2 }
  0xc6   :  { %1014 = vmatprep.subr.bf16.mxu0 %v3209_v1  ;;  %1057 = vmatprep.subr.bf16.mxu1 %v3213_v3 }
  0xc9   :  { %1015 = vmatpush1.bf16.msra.mxu0 %v3219_v4  ;;  %1058 = vmatpush1.bf16.msra.mxu1 %v3223_v5 }
  0xca   :  { %1152 = vmatprep.subr.bf16.mxu0 %v3124_v33  ;;  %1195 = vmatprep.subr.bf16.mxu1 %v3126_v34 }
 0x17f   :  { %v882_v17 = vpop.f32.mrb[0].mxu0  ;;  %v925_v19 = vpop.f32.mrb[0].mxu1 }
 0x180   :  { %v2346_v20 = vadd.f32 %v882_v17, %v3277_v15  ;;  %v884_v21 = vpop.f32.mrb[1].mxu0  ;;  %v927_v22 = vpop.f32.mrb[1].mxu1  ;;  %v2378_v6 = vadd.f32 %v925_v19, %v3284_v31 }
 0x181   :  { %v2347_v23 = vadd.f32 %v884_v21, %v3279_v16  ;;  %v886_v24 = vpop.f32.mrb[2].mxu0  ;;  %v929_v25 = vpop.f32.mrb[2].mxu1  ;;  %v2379_v8 = vadd.f32 %v927_v22, %v3287_v61 }
 0x182   :  { %v2260_v26 = vmul.f32 -1.442695, %v2346_v20  ;;  %v2348_v28 = vadd.f32 %v886_v24, %v3277_v15  ;;  %v888_v29 = vpop.f32.mrb[3].mxu0  ;;  %v931_v30 = vpop.f32.mrb[3].mxu1  ;;  %v2380_v7 = vadd.f32 %v929_v25, %v3284_v31  ;;  %v2262_v9 = vmul.f32 -1.442695, %v2378_v6 }
 0x183   :  { %v2261_v32 = vmul.f32 -1.442695, %v2347_v23  ;;  %v2349_v35 = vadd.f32 %v888_v29, %v3279_v16  ;;  %v2381_v12 = vadd.f32 %v931_v30, %v3287_v61 }
 0x184   :  { %2600 = vpow2.f32 %v2260_v26  ;;  %v2263_v43 = vmul.f32 -1.442695, %v2348_v28  ;;  %v2265_v10 = vmul.f32 -1.442695, %v2380_v7 }
 0x185   :  { %v2264_v52 = vmul.f32 -1.442695, %v2349_v35  ;;  %2602 = vpow2.f32 %v2261_v32 }
 0x186   :  { %2604 = vpow2.f32 %v2263_v43 }
 0x187   :  { %2606 = vpow2.f32 %v2264_v52 }
 0x188   :  { %2608 = vtanh.f32 %v2379_v8 }
 0x189   :  { %2610 = vpow2.f32 %v2262_v9 }
 0x18a   :  { %2612 = vpow2.f32 %v2265_v10 }
 0x18e   :  { %v2601_v11 = vpop.eup %2600 }
 0x18f   :  { %v960_v14 = vadd.f32 1.0, %v2601_v11  ;;  %v2603_v17 = vpop.eup %2602 }
 0x190   :  { %v2605_v13 = vpop.eup %2604  ;;  %v961_v18 = vadd.f32 1.0, %v2603_v17 }
 0x191   :  { %2614 = vrcp.f32 %v960_v14  ;;  %v963_v19 = vadd.f32 1.0, %v2605_v13  ;;  %v2607_v20 = vpop.eup %2606 }
 0x192   :  { %2616 = vtanh.f32 %v2381_v12  ;;  %v964_v21 = vadd.f32 1.0, %v2607_v20  ;;  %v2609_v22 = vpop.eup %2608 }
 0x193   :  { %2618 = vrcp.f32 %v961_v18  ;;  %v2611_v23 = vpop.eup %2610 }
 0x194   :  { %2620 = vrcp.f32 %v963_v19  ;;  %v2613_v24 = vpop.eup %2612  ;;  %v962_v30 = vadd.f32 1.0, %v2611_v23 }
 0x195   :  { %2622 = vrcp.f32 %v964_v21  ;;  %v965_v6 = vadd.f32 1.0, %v2613_v24 }
 0x196   :  { %2624 = vrcp.f32 %v962_v30 }
 0x19b   :  { %v2615_v25 = vpop.eup %2614 }
 0x19c   :  { %v2617_v26 = vpop.eup %2616  ;;  %v982_v27 = vmul.f32 %v2615_v25, %v2609_v22 }
 0x19d   :  { %v2619_v28 = vpop.eup %2618 }
 0x19e   :  { %v2621_v29 = vpop.eup %2620  ;;  %v980_v32 = vmul.f32 0.0, %v2619_v28 }
 0x19f   :  { %v983_v35 = vmul.f32 %v2621_v29, %v2617_v26  ;;  %v2623_v43 = vpop.eup %2622 }
 0x1a0   :  { %v3293_v52 = vadd.f32 %v982_v27, %v980_v32  ;;  %v981_v7 = vmul.f32 0.0, %v2623_v43  ;;  %v2625_v9 = vpop.eup %2624 }
 0x1a2   :  { %2626 = vtanh.f32 %v3293_v52  ;;  %v3296_v8 = vadd.f32 %v983_v35, %v981_v7 }
 0x1a3   :  { %2628 = vrcp.f32 %v965_v6 }
 0x1a4   :  { %2630 = vtanh.f32 %v3296_v8 }
 0x1ac   :  { %v2627_v10 = vpop.eup %2626 }
 0x1ad   :  { %v2629_v11 = vpop.eup %2628  ;;  %v988_v14 = vmul.f32 %v2627_v10, %v2625_v9 }
 0x1ae   :  { %v2631_v12 = vpop.eup %2630 }
 0x1af   :  { %v989_v17 = vmul.f32 %v2631_v12, %v2629_v11 }
 0x1b1   :  { %v999_v13 = vpack.c.bf16 %v989_v17, %v988_v14 }
 0x1b3   :  { %1033 = vmatmul.mubr.bf16.vlgmr.msra.gmra.mrb[4].mxu0 %v999_v13  ;;  %1076 = vmatmul.mubr.bf16.vlgmr.msra.gmra.mrb[4].mxu1 %v999_v13 }
 0x1b4   :  { %1153 = vmatpush1.bf16.msra.mxu0 %v3128_v36  ;;  %1196 = vmatpush1.bf16.msra.mxu1 %v3134_v38 }
 0x1b5   :  { %1154 = vmatprep.subr.bf16.mxu0 %v3131_v37  ;;  %1197 = vmatprep.subr.bf16.mxu1 %v3136_v39 }
 0x1b6   :  { %1184 = vmatprep.mubr.bf16.mxu0 %v3014_v0  ;;  %1227 = vmatprep.mubr.bf16.mxu1 %v3014_v0 }
 0x1b8   :  { %1155 = vmatpush1.bf16.msra.mxu0 %v3140_v40  ;;  %1198 = vmatpush1.bf16.msra.mxu1 %v3147_v42 }
 0x1b9   :  { %1156 = vmatprep.subr.bf16.mxu0 %v3144_v41  ;;  %1199 = vmatprep.subr.bf16.mxu1 %v3156_v46 }
 0x1bc   :  { %1157 = vmatpush1.bf16.msra.mxu0 %v3151_v44  ;;  %1200 = vmatpush1.bf16.msra.mxu1 %v3159_v47 }
 0x1bd   :  { %1158 = vmatprep.subr.bf16.mxu0 %v3153_v45  ;;  %1201 = vmatprep.subr.bf16.mxu1 %v3161_v48 }
 0x1c0   :  { %1159 = vmatpush1.bf16.msra.mxu0 %v3166_v49  ;;  %1202 = vmatpush1.bf16.msra.mxu1 %v3173_v51 }
 0x1c1   :  { %1160 = vmatprep.subr.bf16.mxu0 %v3169_v50  ;;  %1203 = vmatprep.subr.bf16.mxu1 %v3179_v54 }
 0x1c4   :  { %1161 = vmatpush1.bf16.msra.mxu0 %v3176_v53  ;;  %1204 = vmatpush1.bf16.msra.mxu1 %v3185_v56 }
 0x1c5   :  { %1162 = vmatprep.subr.bf16.mxu0 %v3182_v55  ;;  %1205 = vmatprep.subr.bf16.mxu1 %v3187_v57 }
 0x1c8   :  { %1163 = vmatpush1.bf16.msra.mxu0 %v3189_v58  ;;  %1206 = vmatpush1.bf16.msra.mxu1 %v3195_v60 }
 0x1c9   :  { %1164 = vmatprep.subr.bf16.mxu0 %v3193_v59  ;;  %1207 = vmatprep.subr.bf16.mxu1 %v3205_v63 }
 0x1cc   :  { %1165 = vmatpush1.bf16.msra.mxu0 %v3203_v62  ;;  %1208 = vmatpush1.bf16.msra.mxu1 %v3211_v2 }
 0x1cd   :  { %1166 = vmatprep.subr.bf16.mxu0 %v3209_v1  ;;  %1209 = vmatprep.subr.bf16.mxu1 %v3213_v3 }
 0x1d0   :  { %1167 = vmatpush1.bf16.msra.mxu0 %v3219_v4  ;;  %1210 = vmatpush1.bf16.msra.mxu1 %v3223_v5 }
 0x1d1   :  { %1304 = vmatprep.subr.bf16.mxu0 %v3124_v33  ;;  %1347 = vmatprep.subr.bf16.mxu1 %v3126_v34 }
 0x286   :  { %v1034_v18 = vpop.f32.mrb[4].mxu0  ;;  %v1077_v19 = vpop.f32.mrb[4].mxu1 }
 0x287   :  { %v2350_v20 = vadd.f32 %v1034_v18, %v3277_v15  ;;  %v1036_v21 = vpop.f32.mrb[5].mxu0  ;;  %v1079_v22 = vpop.f32.mrb[5].mxu1  ;;  %v2382_v6 = vadd.f32 %v1077_v19, %v3284_v31 }
 0x288   :  { %v2351_v23 = vadd.f32 %v1036_v21, %v3279_v16  ;;  %v1038_v24 = vpop.f32.mrb[6].mxu0  ;;  %v1081_v25 = vpop.f32.mrb[6].mxu1  ;;  %v2383_v9 = vadd.f32 %v1079_v22, %v3287_v61 }
 0x289   :  { %v2266_v26 = vmul.f32 -1.442695, %v2350_v20  ;;  %v2352_v27 = vadd.f32 %v1038_v24, %v3277_v15  ;;  %v1040_v28 = vpop.f32.mrb[7].mxu0  ;;  %v1083_v29 = vpop.f32.mrb[7].mxu1  ;;  %v2384_v7 = vadd.f32 %v1081_v25, %v3284_v31  ;;  %v2268_v10 = vmul.f32 -1.442695, %v2382_v6 }
 0x28a   :  { %v2267_v30 = vmul.f32 -1.442695, %v2351_v23  ;;  %v2353_v32 = vadd.f32 %v1040_v28, %v3279_v16  ;;  %v2385_v14 = vadd.f32 %v1083_v29, %v3287_v61 }
 0x28b   :  { %2632 = vpow2.f32 %v2266_v26  ;;  %v2269_v35 = vmul.f32 -1.442695, %v2352_v27  ;;  %v2271_v11 = vmul.f32 -1.442695, %v2384_v7 }
 0x28c   :  { %v2270_v43 = vmul.f32 -1.442695, %v2353_v32  ;;  %2634 = vpow2.f32 %v2267_v30 }
 0x28d   :  { %2636 = vpow2.f32 %v2269_v35 }
 0x28e   :  { %2638 = vpow2.f32 %v2270_v43 }
 0x28f   :  { %2640 = vtanh.f32 %v2383_v9 }
 0x290   :  { %2642 = vpow2.f32 %v2268_v10 }
 0x291   :  { %2644 = vpow2.f32 %v2271_v11 }
 0x295   :  { %v2633_v12 = vpop.eup %2632 }
 0x296   :  { %v1112_v17 = vadd.f32 1.0, %v2633_v12  ;;  %v2635_v13 = vpop.eup %2634 }
 0x297   :  { %v2637_v18 = vpop.eup %2636  ;;  %v1113_v20 = vadd.f32 1.0, %v2635_v13 }
 0x298   :  { %2646 = vrcp.f32 %v1112_v17  ;;  %v1115_v19 = vadd.f32 1.0, %v2637_v18  ;;  %v2639_v21 = vpop.eup %2638 }
 0x299   :  { %2648 = vtanh.f32 %v2385_v14  ;;  %v1116_v23 = vadd.f32 1.0, %v2639_v21  ;;  %v2641_v22 = vpop.eup %2640 }
 0x29a   :  { %2650 = vrcp.f32 %v1113_v20  ;;  %v2643_v24 = vpop.eup %2642 }
 0x29b   :  { %2652 = vrcp.f32 %v1115_v19  ;;  %v2645_v25 = vpop.eup %2644  ;;  %v1114_v32 = vadd.f32 1.0, %v2643_v24 }
 0x29c   :  { %2654 = vrcp.f32 %v1116_v23  ;;  %v1117_v9 = vadd.f32 1.0, %v2645_v25 }
 0x29d   :  { %2656 = vrcp.f32 %v1114_v32 }
 0x2a2   :  { %v2647_v26 = vpop.eup %2646 }
 0x2a3   :  { %v2649_v27 = vpop.eup %2648  ;;  %v1134_v28 = vmul.f32 %v2647_v26, %v2641_v22 }
 0x2a4   :  { %v2651_v29 = vpop.eup %2650 }
 0x2a5   :  { %v2653_v30 = vpop.eup %2652  ;;  %v1132_v35 = vmul.f32 %v2651_v29, %v3293_v52 }
 0x2a6   :  { %v1135_v43 = vmul.f32 %v2653_v30, %v2649_v27  ;;  %v2655_v6 = vpop.eup %2654 }
 0x2a7   :  { %v3342_v7 = vadd.f32 %v1134_v28, %v1132_v35  ;;  %v1133_v10 = vmul.f32 %v2655_v6, %v3296_v8  ;;  %v2657_v12 = vpop.eup %2656 }
 0x2a9   :  { %2658 = vtanh.f32 %v3342_v7  ;;  %v3346_v11 = vadd.f32 %v1135_v43, %v1133_v10 }
 0x2aa   :  { %2660 = vrcp.f32 %v1117_v9 }
 0x2ab   :  { %2662 = vtanh.f32 %v3346_v11 }
 0x2b3   :  { %v2659_v14 = vpop.eup %2658 }
 0x2b4   :  { %v2661_v17 = vpop.eup %2660  ;;  %v1140_v52 = vmul.f32 %v2659_v14, %v2657_v12 }
 0x2b5   :  { %v2663_v13 = vpop.eup %2662 }
 0x2b6   :  { %v1141_v18 = vmul.f32 %v2663_v13, %v2661_v17 }
 0x2b8   :  { %v1151_v20 = vpack.c.bf16 %v1141_v18, %v1140_v52 }
 0x2ba   :  { %1185 = vmatmul.mubr.bf16.vlgmr.msra.gmra.mrb[8].mxu0 %v1151_v20  ;;  %1228 = vmatmul.mubr.bf16.vlgmr.msra.gmra.mrb[8].mxu1 %v1151_v20 }
 0x2bb   :  { %1305 = vmatpush1.bf16.msra.mxu0 %v3128_v36  ;;  %1348 = vmatpush1.bf16.msra.mxu1 %v3134_v38 }
 0x2bc   :  { %1306 = vmatprep.subr.bf16.mxu0 %v3131_v37  ;;  %1349 = vmatprep.subr.bf16.mxu1 %v3136_v39 }
 0x2bd   :  { %1336 = vmatprep.mubr.bf16.mxu0 %v3014_v0  ;;  %1379 = vmatprep.mubr.bf16.mxu1 %v3014_v0 }
 0x2bf   :  { %1307 = vmatpush1.bf16.msra.mxu0 %v3140_v40  ;;  %1350 = vmatpush1.bf16.msra.mxu1 %v3147_v42 }
 0x2c0   :  { %1308 = vmatprep.subr.bf16.mxu0 %v3144_v41  ;;  %1351 = vmatprep.subr.bf16.mxu1 %v3156_v46 }
 0x2c3   :  { %1309 = vmatpush1.bf16.msra.mxu0 %v3151_v44  ;;  %1352 = vmatpush1.bf16.msra.mxu1 %v3159_v47 }
 0x2c4   :  { %1310 = vmatprep.subr.bf16.mxu0 %v3153_v45  ;;  %1353 = vmatprep.subr.bf16.mxu1 %v3161_v48 }
 0x2c7   :  { %1311 = vmatpush1.bf16.msra.mxu0 %v3166_v49  ;;  %1354 = vmatpush1.bf16.msra.mxu1 %v3173_v51 }
 0x2c8   :  { %1312 = vmatprep.subr.bf16.mxu0 %v3169_v50  ;;  %1355 = vmatprep.subr.bf16.mxu1 %v3179_v54 }
 0x2cb   :  { %1313 = vmatpush1.bf16.msra.mxu0 %v3176_v53  ;;  %1356 = vmatpush1.bf16.msra.mxu1 %v3185_v56 }
 0x2cc   :  { %1314 = vmatprep.subr.bf16.mxu0 %v3182_v55  ;;  %1357 = vmatprep.subr.bf16.mxu1 %v3187_v57 }
 0x2cf   :  { %1315 = vmatpush1.bf16.msra.mxu0 %v3189_v58  ;;  %1358 = vmatpush1.bf16.msra.mxu1 %v3195_v60 }
 0x2d0   :  { %1316 = vmatprep.subr.bf16.mxu0 %v3193_v59  ;;  %1359 = vmatprep.subr.bf16.mxu1 %v3205_v63 }
 0x2d3   :  { %1317 = vmatpush1.bf16.msra.mxu0 %v3203_v62  ;;  %1360 = vmatpush1.bf16.msra.mxu1 %v3211_v2 }
 0x2d4   :  { %1318 = vmatprep.subr.bf16.mxu0 %v3209_v1  ;;  %1361 = vmatprep.subr.bf16.mxu1 %v3213_v3 }
 0x2d7   :  { %1319 = vmatpush1.bf16.msra.mxu0 %v3219_v4  ;;  %1362 = vmatpush1.bf16.msra.mxu1 %v3223_v5 }
 0x2d8   :  { %1456 = vmatprep.subr.bf16.mxu0 %v3124_v33  ;;  %1499 = vmatprep.subr.bf16.mxu1 %v3126_v34 }
 0x38d   :  { %v1186_v8 = vpop.f32.mrb[8].mxu0  ;;  %v1229_v19 = vpop.f32.mrb[8].mxu1 }
 0x38e   :  { %v2354_v21 = vadd.f32 %v1186_v8, %v3277_v15  ;;  %v1188_v23 = vpop.f32.mrb[9].mxu0  ;;  %v1231_v22 = vpop.f32.mrb[9].mxu1  ;;  %v2386_v43 = vadd.f32 %v1229_v19, %v3284_v31 }
 0x38f   :  { %v2355_v24 = vadd.f32 %v1188_v23, %v3279_v16  ;;  %v1190_v25 = vpop.f32.mrb[10].mxu0  ;;  %v1233_v26 = vpop.f32.mrb[10].mxu1  ;;  %v2387_v9 = vadd.f32 %v1231_v22, %v3287_v61 }
 0x390   :  { %v2272_v27 = vmul.f32 -1.442695, %v2354_v21  ;;  %v2356_v28 = vadd.f32 %v1190_v25, %v3277_v15  ;;  %v1192_v29 = vpop.f32.mrb[11].mxu0  ;;  %v1235_v30 = vpop.f32.mrb[11].mxu1  ;;  %v2388_v6 = vadd.f32 %v1233_v26, %v3284_v31  ;;  %v2274_v10 = vmul.f32 -1.442695, %v2386_v43 }
 0x391   :  { %v2273_v32 = vmul.f32 -1.442695, %v2355_v24  ;;  %v2357_v33 = vadd.f32 %v1192_v29, %v3279_v16  ;;  %v2389_v17 = vadd.f32 %v1235_v30, %v3287_v61 }
 0x392   :  { %2664 = vpow2.f32 %v2272_v27  ;;  %v2275_v34 = vmul.f32 -1.442695, %v2356_v28  ;;  %v2277_v12 = vmul.f32 -1.442695, %v2388_v6 }
 0x393   :  { %v2276_v35 = vmul.f32 -1.442695, %v2357_v33  ;;  %2666 = vpow2.f32 %v2273_v32 }
 0x394   :  { %2668 = vpow2.f32 %v2275_v34 }
 0x395   :  { %2670 = vpow2.f32 %v2276_v35 }
 0x396   :  { %2672 = vtanh.f32 %v2387_v9 }
 0x397   :  { %2674 = vpow2.f32 %v2274_v10 }
 0x398   :  { %2676 = vpow2.f32 %v2277_v12 }
 0x39c   :  { %v2665_v14 = vpop.eup %2664 }
 0x39d   :  { %v1264_v13 = vadd.f32 1.0, %v2665_v14  ;;  %v2667_v52 = vpop.eup %2666 }
 0x39e   :  { %v2669_v18 = vpop.eup %2668  ;;  %v1265_v20 = vadd.f32 1.0, %v2667_v52 }
 0x39f   :  { %2678 = vrcp.f32 %v1264_v13  ;;  %v1267_v8 = vadd.f32 1.0, %v2669_v18  ;;  %v2671_v19 = vpop.eup %2670 }
 0x3a0   :  { %2680 = vtanh.f32 %v2389_v17  ;;  %v1268_v21 = vadd.f32 1.0, %v2671_v19  ;;  %v2673_v23 = vpop.eup %2672 }
 0x3a1   :  { %2682 = vrcp.f32 %v1265_v20  ;;  %v2675_v22 = vpop.eup %2674 }
 0x3a2   :  { %2684 = vrcp.f32 %v1267_v8  ;;  %v2677_v24 = vpop.eup %2676  ;;  %v1266_v30 = vadd.f32 1.0, %v2675_v22 }
 0x3a3   :  { %2686 = vrcp.f32 %v1268_v21  ;;  %v1269_v43 = vadd.f32 1.0, %v2677_v24 }
 0x3a4   :  { %2688 = vrcp.f32 %v1266_v30 }
 0x3a9   :  { %v2679_v25 = vpop.eup %2678 }
 0x3aa   :  { %v2681_v26 = vpop.eup %2680  ;;  %v1286_v27 = vmul.f32 %v2679_v25, %v2673_v23 }
 0x3ab   :  { %v2683_v28 = vpop.eup %2682 }
 0x3ac   :  { %v2685_v29 = vpop.eup %2684  ;;  %v1284_v32 = vmul.f32 %v2683_v28, %v3342_v7 }
 0x3ad   :  { %v1287_v33 = vmul.f32 %v2685_v29, %v2681_v26  ;;  %v2687_v34 = vpop.eup %2686 }
 0x3ae   :  { %v3392_v35 = vadd.f32 %v1286_v27, %v1284_v32  ;;  %v1285_v6 = vmul.f32 %v2687_v34, %v3346_v11  ;;  %v2689_v10 = vpop.eup %2688 }
 0x3b0   :  { %2690 = vtanh.f32 %v3392_v35  ;;  %v3396_v9 = vadd.f32 %v1287_v33, %v1285_v6 }
 0x3b1   :  { %2692 = vrcp.f32 %v1269_v43 }
 0x3b2   :  { %2694 = vtanh.f32 %v3396_v9 }
 0x3ba   :  { %v2691_v12 = vpop.eup %2690 }
 0x3bb   :  { %v2693_v14 = vpop.eup %2692  ;;  %v1292_v7 = vmul.f32 %v2691_v12, %v2689_v10 }
 0x3bc   :  { %v2695_v17 = vpop.eup %2694 }
 0x3bd   :  { %v1293_v13 = vmul.f32 %v2695_v17, %v2693_v14 }
 0x3bf   :  { %v1303_v52 = vpack.c.bf16 %v1293_v13, %v1292_v7 }
 0x3c1   :  { %1337 = vmatmul.mubr.bf16.vlgmr.msra.gmra.mrb[12].mxu0 %v1303_v52  ;;  %1380 = vmatmul.mubr.bf16.vlgmr.msra.gmra.mrb[12].mxu1 %v1303_v52 }
 0x3c2   :  { %1457 = vmatpush1.bf16.msra.mxu0 %v3128_v36  ;;  %1500 = vmatpush1.bf16.msra.mxu1 %v3134_v38  ;;  %v3431_v36 = vld [vmem:[#allocation8 + $0x4] ss:$16 sps:$4 sm:$0xff]  }
 0x3c3   :  { %1458 = vmatprep.subr.bf16.mxu0 %v3131_v37  ;;  %1501 = vmatprep.subr.bf16.mxu1 %v3136_v39  ;;  %v3434_v37 = vld [vmem:[#allocation8 + $0xc] ss:$16 sps:$4 sm:$0xff]  }
 0x3c4   :  { %1488 = vmatprep.mubr.bf16.mxu0 %v3014_v0  ;;  %1531 = vmatprep.mubr.bf16.mxu1 %v3014_v0 }
 0x3c6   :  { %1459 = vmatpush1.bf16.msra.mxu0 %v3140_v40  ;;  %1502 = vmatpush1.bf16.msra.mxu1 %v3147_v42 }
 0x3c7   :  { %1460 = vmatprep.subr.bf16.mxu0 %v3144_v41  ;;  %1503 = vmatprep.subr.bf16.mxu1 %v3156_v46 }
 0x3ca   :  { %1461 = vmatpush1.bf16.msra.mxu0 %v3151_v44  ;;  %1504 = vmatpush1.bf16.msra.mxu1 %v3159_v47 }
 0x3cb   :  { %1462 = vmatprep.subr.bf16.mxu0 %v3153_v45  ;;  %1505 = vmatprep.subr.bf16.mxu1 %v3161_v48 }
 0x3ce   :  { %1463 = vmatpush1.bf16.msra.mxu0 %v3166_v49  ;;  %1506 = vmatpush1.bf16.msra.mxu1 %v3173_v51 }
 0x3cf   :  { %1464 = vmatprep.subr.bf16.mxu0 %v3169_v50  ;;  %1507 = vmatprep.subr.bf16.mxu1 %v3179_v54 }
 0x3d2   :  { %1465 = vmatpush1.bf16.msra.mxu0 %v3176_v53  ;;  %1508 = vmatpush1.bf16.msra.mxu1 %v3185_v56 }
 0x3d3   :  { %1466 = vmatprep.subr.bf16.mxu0 %v3182_v55  ;;  %1509 = vmatprep.subr.bf16.mxu1 %v3187_v57 }
 0x3d6   :  { %1467 = vmatpush1.bf16.msra.mxu0 %v3189_v58  ;;  %1510 = vmatpush1.bf16.msra.mxu1 %v3195_v60 }
 0x3d7   :  { %1468 = vmatprep.subr.bf16.mxu0 %v3193_v59  ;;  %1511 = vmatprep.subr.bf16.mxu1 %v3205_v63 }
 0x3da   :  { %1469 = vmatpush1.bf16.msra.mxu0 %v3203_v62  ;;  %1512 = vmatpush1.bf16.msra.mxu1 %v3211_v2 }
 0x3db   :  { %1470 = vmatprep.subr.bf16.mxu0 %v3209_v1  ;;  %1513 = vmatprep.subr.bf16.mxu1 %v3213_v3 }
 0x3de   :  { %1471 = vmatpush1.bf16.msra.mxu0 %v3219_v4  ;;  %1514 = vmatpush1.bf16.msra.mxu1 %v3223_v5 }
 0x3df   :  { %1608 = vmatprep.subr.bf16.mxu0 %v3431_v36  ;;  %1651 = vmatprep.subr.bf16.mxu1 %v3434_v37 }
 0x494   :  { %v1338_v38 = vpop.f32.mrb[12].mxu0  ;;  %v1381_v39 = vpop.f32.mrb[12].mxu1 }
 0x495   :  { %v2358_v40 = vadd.f32 %v1338_v38, %v3277_v15  ;;  %v1340_v41 = vpop.f32.mrb[13].mxu0  ;;  %v1383_v42 = vpop.f32.mrb[13].mxu1  ;;  %v2390_v56 = vadd.f32 %v1381_v39, %v3284_v31 }
 0x496   :  { %v2359_v44 = vadd.f32 %v1340_v41, %v3279_v16  ;;  %v1342_v45 = vpop.f32.mrb[14].mxu0  ;;  %v1385_v46 = vpop.f32.mrb[14].mxu1  ;;  %v2391_v58 = vadd.f32 %v1383_v42, %v3287_v61  ;;  %v3453_v42 = vld [vmem:[#allocation8] ss:$16 sps:$4 sm:$0xff]  }
 0x497   :  { %v2278_v47 = vmul.f32 -1.442695, %v2358_v40  ;;  %v2360_v48 = vadd.f32 %v1342_v45, %v3277_v15  ;;  %v1344_v49 = vpop.f32.mrb[15].mxu0  ;;  %v1387_v50 = vpop.f32.mrb[15].mxu1  ;;  %v2392_v57 = vadd.f32 %v1385_v46, %v3284_v31  ;;  %v2280_v59 = vmul.f32 -1.442695, %v2390_v56 }
 0x498   :  { %v2279_v51 = vmul.f32 -1.442695, %v2359_v44  ;;  %v2361_v53 = vadd.f32 %v1344_v49, %v3279_v16  ;;  %v2393_v18 = vadd.f32 %v1387_v50, %v3287_v61  ;;  %v3459_v44 = vld [vmem:[#allocation8 + $0x24] ss:$16 sps:$4 sm:$0xff]   ;;  %v3462_v45 = vld [vmem:[#allocation8 + $0x2c] ss:$16 sps:$4 sm:$0xff]  }
 0x499   :  { %2696 = vpow2.f32 %v2278_v47  ;;  %v2281_v54 = vmul.f32 -1.442695, %v2360_v48  ;;  %v2283_v60 = vmul.f32 -1.442695, %v2392_v57  ;;  %v3467_v46 = vld [vmem:[#allocation8 + $0x20] ss:$16 sps:$4 sm:$0xff]  }
 0x49a   :  { %v2282_v55 = vmul.f32 -1.442695, %v2361_v53  ;;  %2698 = vpow2.f32 %v2279_v51  ;;  %v3470_v47 = vld [vmem:[#allocation8 + $0x28] ss:$16 sps:$4 sm:$0xff]   ;;  %v3473_v48 = vld [vmem:[#allocation8 + $0x44] ss:$16 sps:$4 sm:$0xff]  }
 0x49b   :  { %2700 = vpow2.f32 %v2281_v54  ;;  %v3476_v49 = vld [vmem:[#allocation8 + $0x4c] ss:$16 sps:$4 sm:$0xff]   ;;  %v3479_v50 = vld [vmem:[#allocation8 + $0x40] ss:$16 sps:$4 sm:$0xff]   ;;  %v3482_v51 = vld [vmem:[#allocation8 + $0x48] ss:$16 sps:$4 sm:$0xff]  }
 0x49c   :  { %2702 = vpow2.f32 %v2282_v55  ;;  %v3485_v53 = vld [vmem:[#allocation8 + $0x64] ss:$16 sps:$4 sm:$0xff]   ;;  %v3488_v54 = vld [vmem:[#allocation8 + $0x6c] ss:$16 sps:$4 sm:$0xff]   ;;  %v3491_v55 = vld [vmem:[#allocation8 + $0x60] ss:$16 sps:$4 sm:$0xff]  }
 0x49d   :  { %2704 = vtanh.f32 %v2391_v58  ;;  %v3494_v56 = vld [vmem:[#allocation8 + $0x68] ss:$16 sps:$4 sm:$0xff]   ;;  %v3497_v57 = vld [vmem:[#allocation8 + $0x84] ss:$16 sps:$4 sm:$0xff]   ;;  %v3500_v58 = vld [vmem:[#allocation8 + $0x8c] ss:$16 sps:$4 sm:$0xff]  }
 0x49e   :  { %2706 = vpow2.f32 %v2280_v59  ;;  %v3503_v59 = vld [vmem:[#allocation8 + $0x80] ss:$16 sps:$4 sm:$0xff]  }
 0x49f   :  { %2708 = vpow2.f32 %v2283_v60  ;;  %v3506_v60 = vld [vmem:[#allocation8 + $0x88] ss:$16 sps:$4 sm:$0xff]  }
 0x4a3   :  { %v2697_v11 = vpop.eup %2696 }
 0x4a4   :  { %v1416_v20 = vadd.f32 1.0, %v2697_v11  ;;  %v2699_v8 = vpop.eup %2698  ;;  %v3509_v11 = vld [vmem:[#allocation8 + $0xa4] ss:$16 sps:$4 sm:$0xff]  }
 0x4a5   :  { %v2701_v19 = vpop.eup %2700  ;;  %v1417_v21 = vadd.f32 1.0, %v2699_v8  ;;  %v3518_v8 = vld [vmem:[#allocation8 + $0xa8] ss:$16 sps:$4 sm:$0xff]  }
 0x4a6   :  { %2710 = vrcp.f32 %v1416_v20  ;;  %v1419_v23 = vadd.f32 1.0, %v2701_v19  ;;  %v2703_v22 = vpop.eup %2702  ;;  %v3515_v20 = vld [vmem:[#allocation8 + $0xa0] ss:$16 sps:$4 sm:$0xff]   ;;  %v3521_v19 = vld [vmem:[#allocation8 + $0xc4] ss:$16 sps:$4 sm:$0xff]  }
 0x4a7   :  { %2712 = vtanh.f32 %v2393_v18  ;;  %v1420_v24 = vadd.f32 1.0, %v2703_v22  ;;  %v2705_v25 = vpop.eup %2704  ;;  %v3512_v18 = vld [vmem:[#allocation8 + $0xac] ss:$16 sps:$4 sm:$0xff]  }
 0x4a8   :  { %2714 = vrcp.f32 %v1417_v21  ;;  %v2707_v26 = vpop.eup %2706 }
 0x4a9   :  { %2716 = vrcp.f32 %v1419_v23  ;;  %v2709_v27 = vpop.eup %2708  ;;  %v1418_v34 = vadd.f32 1.0, %v2707_v26 }
 0x4aa   :  { %2718 = vrcp.f32 %v1420_v24  ;;  %v1421_v14 = vadd.f32 1.0, %v2709_v27 }
 0x4ab   :  { %2720 = vrcp.f32 %v1418_v34 }
 0x4b0   :  { %v2711_v28 = vpop.eup %2710 }
 0x4b1   :  { %v2713_v29 = vpop.eup %2712  ;;  %v1438_v30 = vmul.f32 %v2711_v28, %v2705_v25 }
 0x4b2   :  { %v2715_v32 = vpop.eup %2714 }
 0x4b3   :  { %v2717_v33 = vpop.eup %2716  ;;  %v1436_v43 = vmul.f32 %v2715_v32, %v3392_v35 }
 0x4b4   :  { %v1439_v6 = vmul.f32 %v2717_v33, %v2713_v29  ;;  %v2719_v10 = vpop.eup %2718 }
 0x4b5   :  { %v3446_v12 = vadd.f32 %v1438_v30, %v1436_v43  ;;  %v1437_v17 = vmul.f32 %v2719_v10, %v3396_v9  ;;  %v2721_v13 = vpop.eup %2720  ;;  %v3456_v9 = vld [vmem:[#allocation8 + $0x8] ss:$16 sps:$4 sm:$0xff]  }
 0x4b7   :  { %2722 = vtanh.f32 %v3446_v12  ;;  %v3450_v7 = vadd.f32 %v1439_v6, %v1437_v17 }
 0x4b8   :  { %2724 = vrcp.f32 %v1421_v14 }
 0x4b9   :  { %2726 = vtanh.f32 %v3450_v7 }
 0x4c1   :  { %v2723_v52 = vpop.eup %2722 }
 0x4c2   :  { %v2725_v38 = vpop.eup %2724  ;;  %v1444_v35 = vmul.f32 %v2723_v52, %v2721_v13 }
 0x4c3   :  { %v2727_v39 = vpop.eup %2726 }
 0x4c4   :  { %v1445_v40 = vmul.f32 %v2727_v39, %v2725_v38 }
 0x4c6   :  { %v1455_v41 = vpack.c.bf16 %v1445_v40, %v1444_v35 }
 0x4c8   :  { %1489 = vmatmul.mubr.bf16.vlgmr.msra.gmra.mrb[16].mxu0 %v1455_v41  ;;  %1532 = vmatmul.mubr.bf16.vlgmr.msra.gmra.mrb[16].mxu1 %v1455_v41 }
 0x4c9   :  { %1609 = vmatpush1.bf16.msra.mxu0 %v3453_v42  ;;  %1652 = vmatpush1.bf16.msra.mxu1 %v3456_v9 }
 0x4ca   :  { %1610 = vmatprep.subr.bf16.mxu0 %v3459_v44  ;;  %1653 = vmatprep.subr.bf16.mxu1 %v3462_v45 }
 0x4cb   :  { %1640 = vmatprep.mubr.bf16.mxu0 %v3014_v0  ;;  %1683 = vmatprep.mubr.bf16.mxu1 %v3014_v0 }
 0x4cd   :  { %1611 = vmatpush1.bf16.msra.mxu0 %v3467_v46  ;;  %1654 = vmatpush1.bf16.msra.mxu1 %v3470_v47 }
 0x4ce   :  { %1612 = vmatprep.subr.bf16.mxu0 %v3473_v48  ;;  %1655 = vmatprep.subr.bf16.mxu1 %v3476_v49 }
 0x4d1   :  { %1613 = vmatpush1.bf16.msra.mxu0 %v3479_v50  ;;  %1656 = vmatpush1.bf16.msra.mxu1 %v3482_v51 }
 0x4d2   :  { %1614 = vmatprep.subr.bf16.mxu0 %v3485_v53  ;;  %1657 = vmatprep.subr.bf16.mxu1 %v3488_v54 }
 0x4d5   :  { %1615 = vmatpush1.bf16.msra.mxu0 %v3491_v55  ;;  %1658 = vmatpush1.bf16.msra.mxu1 %v3494_v56 }
 0x4d6   :  { %1616 = vmatprep.subr.bf16.mxu0 %v3497_v57  ;;  %1659 = vmatprep.subr.bf16.mxu1 %v3500_v58 }
 0x4d9   :  { %1617 = vmatpush1.bf16.msra.mxu0 %v3503_v59  ;;  %1660 = vmatpush1.bf16.msra.mxu1 %v3506_v60 }
 0x4da   :  { %1618 = vmatprep.subr.bf16.mxu0 %v3509_v11  ;;  %1661 = vmatprep.subr.bf16.mxu1 %v3512_v18 }
 0x4dd   :  { %1619 = vmatpush1.bf16.msra.mxu0 %v3515_v20  ;;  %1662 = vmatpush1.bf16.msra.mxu1 %v3518_v8 }
 0x4de   :  { %1620 = vmatprep.subr.bf16.mxu0 %v3521_v19  ;;  %1663 = vmatprep.subr.bf16.mxu1 %v3205_v63 }
 0x4e1   :  { %1621 = vmatpush1.bf16.msra.mxu0 %v3203_v62  ;;  %1664 = vmatpush1.bf16.msra.mxu1 %v3211_v2 }
 0x4e2   :  { %1622 = vmatprep.subr.bf16.mxu0 %v3209_v1  ;;  %1665 = vmatprep.subr.bf16.mxu1 %v3213_v3 }
 0x4e5   :  { %1623 = vmatpush1.bf16.msra.mxu0 %v3219_v4  ;;  %1666 = vmatpush1.bf16.msra.mxu1 %v3223_v5 }
 0x4e6   :  { %1760 = vmatprep.subr.bf16.mxu0 %v3431_v36  ;;  %1803 = vmatprep.subr.bf16.mxu1 %v3434_v37 }
 0x59b   :  { %v1490_v21 = vpop.f32.mrb[16].mxu0  ;;  %v1533_v23 = vpop.f32.mrb[16].mxu1 }
 0x59c   :  { %v2362_v63 = vadd.f32 %v1490_v21, %v3277_v15  ;;  %v1492_v22 = vpop.f32.mrb[17].mxu0  ;;  %v1535_v62 = vpop.f32.mrb[17].mxu1  ;;  %v2394_v30 = vadd.f32 %v1533_v23, %v3284_v31 }
 0x59d   :  { %v2363_v2 = vadd.f32 %v1492_v22, %v3279_v16  ;;  %v1494_v24 = vpop.f32.mrb[18].mxu0  ;;  %v1537_v1 = vpop.f32.mrb[18].mxu1  ;;  %v2395_v33 = vadd.f32 %v1535_v62, %v3287_v61 }
 0x59e   :  { %v2284_v25 = vmul.f32 -1.442695, %v2362_v63  ;;  %v2364_v3 = vadd.f32 %v1494_v24, %v3277_v15  ;;  %v1496_v4 = vpop.f32.mrb[19].mxu0  ;;  %v1539_v26 = vpop.f32.mrb[19].mxu1  ;;  %v2396_v32 = vadd.f32 %v1537_v1, %v3284_v31  ;;  %v2286_v34 = vmul.f32 -1.442695, %v2394_v30 }
 0x59f   :  { %v2285_v5 = vmul.f32 -1.442695, %v2363_v2  ;;  %v2365_v27 = vadd.f32 %v1496_v4, %v3279_v16  ;;  %v2397_v10 = vadd.f32 %v1539_v26, %v3287_v61 }
 0x5a0   :  { %2728 = vpow2.f32 %v2284_v25  ;;  %v2287_v28 = vmul.f32 -1.442695, %v2364_v3  ;;  %v2289_v43 = vmul.f32 -1.442695, %v2396_v32 }
 0x5a1   :  { %v2288_v29 = vmul.f32 -1.442695, %v2365_v27  ;;  %2730 = vpow2.f32 %v2285_v5 }
 0x5a2   :  { %2732 = vpow2.f32 %v2287_v28 }
 0x5a3   :  { %2734 = vpow2.f32 %v2288_v29 }
 0x5a4   :  { %2736 = vtanh.f32 %v2395_v33 }
 0x5a5   :  { %2738 = vpow2.f32 %v2286_v34 }
 0x5a6   :  { %2740 = vpow2.f32 %v2289_v43  ;;  %v3577_v43 = vld [vmem:[#allocation8 + $0xc0] ss:$16 sps:$4 sm:$0xff]  }
 0x5aa   :  { %v2729_v6 = vpop.eup %2728 }
 0x5ab   :  { %v1568_v14 = vadd.f32 1.0, %v2729_v6  ;;  %v2731_v17 = vpop.eup %2730  ;;  %v3580_v6 = vld [vmem:[#allocation8 + $0xc8] ss:$16 sps:$4 sm:$0xff]  }
 0x5ac   :  { %v2733_v13 = vpop.eup %2732  ;;  %v1569_v52 = vadd.f32 1.0, %v2731_v17  ;;  %v3589_v17 = vld [vmem:[#allocation8 + $0xe0] ss:$16 sps:$4 sm:$0xff]  }
 0x5ad   :  { %2742 = vrcp.f32 %v1568_v14  ;;  %v1571_v38 = vadd.f32 1.0, %v2733_v13  ;;  %v2735_v39 = vpop.eup %2734  ;;  %v3586_v14 = vld [vmem:[#allocation8 + $0xec] ss:$16 sps:$4 sm:$0xff]   ;;  %v3592_v13 = vld [vmem:[#allocation8 + $0xe8] ss:$16 sps:$4 sm:$0xff]  }
 0x5ae   :  { %2744 = vtanh.f32 %v2397_v10  ;;  %v1572_v35 = vadd.f32 1.0, %v2735_v39  ;;  %v2737_v40 = vpop.eup %2736  ;;  %v3583_v10 = vld [vmem:[#allocation8 + $0xe4] ss:$16 sps:$4 sm:$0xff]  }
 0x5af   :  { %2746 = vrcp.f32 %v1569_v52  ;;  %v2739_v41 = vpop.eup %2738 }
 0x5b0   :  { %2748 = vrcp.f32 %v1571_v38  ;;  %v2741_v21 = vpop.eup %2740  ;;  %v1570_v24 = vadd.f32 1.0, %v2739_v41 }
 0x5b1   :  { %2750 = vrcp.f32 %v1572_v35  ;;  %v1573_v26 = vadd.f32 1.0, %v2741_v21 }
 0x5b2   :  { %2752 = vrcp.f32 %v1570_v24 }
 0x5b7   :  { %v2743_v23 = vpop.eup %2742 }
 0x5b8   :  { %v2745_v63 = vpop.eup %2744  ;;  %v1590_v22 = vmul.f32 %v2743_v23, %v2737_v40 }
 0x5b9   :  { %v2747_v62 = vpop.eup %2746 }
 0x5ba   :  { %v2749_v2 = vpop.eup %2748  ;;  %v1588_v1 = vmul.f32 %v2747_v62, %v3446_v12 }
 0x5bb   :  { %v1591_v25 = vmul.f32 %v2749_v2, %v2745_v63  ;;  %v2751_v3 = vpop.eup %2750 }
 0x5bc   :  { %v3542_v4 = vadd.f32 %v1590_v22, %v1588_v1  ;;  %v1589_v5 = vmul.f32 %v2751_v3, %v3450_v7  ;;  %v2753_v28 = vpop.eup %2752  ;;  %v3574_v7 = vld [vmem:[#allocation8 + $0xcc] ss:$16 sps:$4 sm:$0xff]  }
 0x5be   :  { %2754 = vtanh.f32 %v3542_v4  ;;  %v3546_v27 = vadd.f32 %v1591_v25, %v1589_v5 }
 0x5bf   :  { %2756 = vrcp.f32 %v1573_v26 }
 0x5c0   :  { %2758 = vtanh.f32 %v3546_v27 }
 0x5c8   :  { %v2755_v29 = vpop.eup %2754 }
 0x5c9   :  { %v2757_v30 = vpop.eup %2756  ;;  %v1596_v12 = vmul.f32 %v2755_v29, %v2753_v28 }
 0x5ca   :  { %v2759_v32 = vpop.eup %2758 }
 0x5cb   :  { %v1597_v33 = vmul.f32 %v2759_v32, %v2757_v30 }
 0x5cd   :  { %v1607_v34 = vpack.c.bf16 %v1597_v33, %v1596_v12 }
 0x5cf   :  { %1641 = vmatmul.mubr.bf16.vlgmr.msra.gmra.mrb[20].mxu0 %v1607_v34  ;;  %1684 = vmatmul.mubr.bf16.vlgmr.msra.gmra.mrb[20].mxu1 %v1607_v34 }
 0x5d0   :  { %1761 = vmatpush1.bf16.msra.mxu0 %v3453_v42  ;;  %1804 = vmatpush1.bf16.msra.mxu1 %v3456_v9 }
 0x5d1   :  { %1762 = vmatprep.subr.bf16.mxu0 %v3459_v44  ;;  %1805 = vmatprep.subr.bf16.mxu1 %v3462_v45 }
 0x5d2   :  { %1792 = vmatprep.mubr.bf16.mxu0 %v3014_v0  ;;  %1835 = vmatprep.mubr.bf16.mxu1 %v3014_v0 }
 0x5d4   :  { %1763 = vmatpush1.bf16.msra.mxu0 %v3467_v46  ;;  %1806 = vmatpush1.bf16.msra.mxu1 %v3470_v47 }
 0x5d5   :  { %1764 = vmatprep.subr.bf16.mxu0 %v3473_v48  ;;  %1807 = vmatprep.subr.bf16.mxu1 %v3476_v49 }
 0x5d8   :  { %1765 = vmatpush1.bf16.msra.mxu0 %v3479_v50  ;;  %1808 = vmatpush1.bf16.msra.mxu1 %v3482_v51 }
 0x5d9   :  { %1766 = vmatprep.subr.bf16.mxu0 %v3485_v53  ;;  %1809 = vmatprep.subr.bf16.mxu1 %v3488_v54 }
 0x5dc   :  { %1767 = vmatpush1.bf16.msra.mxu0 %v3491_v55  ;;  %1810 = vmatpush1.bf16.msra.mxu1 %v3494_v56 }
 0x5dd   :  { %1768 = vmatprep.subr.bf16.mxu0 %v3497_v57  ;;  %1811 = vmatprep.subr.bf16.mxu1 %v3500_v58 }
 0x5e0   :  { %1769 = vmatpush1.bf16.msra.mxu0 %v3503_v59  ;;  %1812 = vmatpush1.bf16.msra.mxu1 %v3506_v60 }
 0x5e1   :  { %1770 = vmatprep.subr.bf16.mxu0 %v3509_v11  ;;  %1813 = vmatprep.subr.bf16.mxu1 %v3512_v18 }
 0x5e4   :  { %1771 = vmatpush1.bf16.msra.mxu0 %v3515_v20  ;;  %1814 = vmatpush1.bf16.msra.mxu1 %v3518_v8 }
 0x5e5   :  { %1772 = vmatprep.subr.bf16.mxu0 %v3521_v19  ;;  %1815 = vmatprep.subr.bf16.mxu1 %v3574_v7 }
 0x5e8   :  { %1773 = vmatpush1.bf16.msra.mxu0 %v3577_v43  ;;  %1816 = vmatpush1.bf16.msra.mxu1 %v3580_v6 }
 0x5e9   :  { %1774 = vmatprep.subr.bf16.mxu0 %v3583_v10  ;;  %1817 = vmatprep.subr.bf16.mxu1 %v3586_v14 }
 0x5ec   :  { %1775 = vmatpush1.bf16.msra.mxu0 %v3589_v17  ;;  %1818 = vmatpush1.bf16.msra.mxu1 %v3592_v13 }
 0x5ed   :  { %1912 = vmatprep.subr.bf16.mxu0 %v3431_v36  ;;  %1955 = vmatprep.subr.bf16.mxu1 %v3434_v37 }
 0x6a2   :  { %v1642_v52 = vpop.f32.mrb[20].mxu0  ;;  %v1685_v38 = vpop.f32.mrb[20].mxu1 }
 0x6a3   :  { %v2366_v39 = vadd.f32 %v1642_v52, %v3277_v15  ;;  %v1644_v35 = vpop.f32.mrb[21].mxu0  ;;  %v1687_v40 = vpop.f32.mrb[21].mxu1  ;;  %v2398_v25 = vadd.f32 %v1685_v38, %v3284_v31 }
 0x6a4   :  { %v2367_v41 = vadd.f32 %v1644_v35, %v3279_v16  ;;  %v1646_v21 = vpop.f32.mrb[22].mxu0  ;;  %v1689_v23 = vpop.f32.mrb[22].mxu1  ;;  %v2399_v26 = vadd.f32 %v1687_v40, %v3287_v61 }
 0x6a5   :  { %v2290_v63 = vmul.f32 -1.442695, %v2366_v39  ;;  %v2368_v22 = vadd.f32 %v1646_v21, %v3277_v15  ;;  %v1648_v62 = vpop.f32.mrb[23].mxu0  ;;  %v1691_v2 = vpop.f32.mrb[23].mxu1  ;;  %v2400_v3 = vadd.f32 %v1689_v23, %v3284_v31  ;;  %v2292_v5 = vmul.f32 -1.442695, %v2398_v25 }
 0x6a6   :  { %v2291_v24 = vmul.f32 -1.442695, %v2367_v41  ;;  %v2369_v36 = vadd.f32 %v1648_v62, %v3279_v16  ;;  %v2401_v30 = vadd.f32 %v1691_v2, %v3287_v61 }
 0x6a7   :  { %2760 = vpow2.f32 %v2290_v63  ;;  %v2293_v37 = vmul.f32 -1.442695, %v2368_v22  ;;  %v2295_v28 = vmul.f32 -1.442695, %v2400_v3 }
 0x6a8   :  { %v2294_v1 = vmul.f32 -1.442695, %v2369_v36  ;;  %2762 = vpow2.f32 %v2291_v24 }
 0x6a9   :  { %2764 = vpow2.f32 %v2293_v37 }
 0x6aa   :  { %2766 = vpow2.f32 %v2294_v1 }
 0x6ab   :  { %2768 = vtanh.f32 %v2399_v26 }
 0x6ac   :  { %2770 = vpow2.f32 %v2292_v5 }
 0x6ad   :  { %2772 = vpow2.f32 %v2295_v28 }
 0x6b1   :  { %v2761_v29 = vpop.eup %2760 }
 0x6b2   :  { %v1720_v32 = vadd.f32 1.0, %v2761_v29  ;;  %v2763_v12 = vpop.eup %2762 }
 0x6b3   :  { %v2765_v33 = vpop.eup %2764  ;;  %v1721_v34 = vadd.f32 1.0, %v2763_v12 }
 0x6b4   :  { %2774 = vrcp.f32 %v1720_v32  ;;  %v1723_v52 = vadd.f32 1.0, %v2765_v33  ;;  %v2767_v38 = vpop.eup %2766 }
 0x6b5   :  { %2776 = vtanh.f32 %v2401_v30  ;;  %v1724_v39 = vadd.f32 1.0, %v2767_v38  ;;  %v2769_v35 = vpop.eup %2768 }
 0x6b6   :  { %2778 = vrcp.f32 %v1721_v34  ;;  %v2771_v40 = vpop.eup %2770 }
 0x6b7   :  { %2780 = vrcp.f32 %v1723_v52  ;;  %v2773_v41 = vpop.eup %2772  ;;  %v1722_v2 = vadd.f32 1.0, %v2771_v40 }
 0x6b8   :  { %2782 = vrcp.f32 %v1724_v39  ;;  %v1725_v25 = vadd.f32 1.0, %v2773_v41 }
 0x6b9   :  { %2784 = vrcp.f32 %v1722_v2 }
 0x6be   :  { %v2775_v21 = vpop.eup %2774 }
 0x6bf   :  { %v2777_v23 = vpop.eup %2776  ;;  %v1742_v63 = vmul.f32 %v2775_v21, %v2769_v35 }
 0x6c0   :  { %v2779_v22 = vpop.eup %2778 }
 0x6c1   :  { %v2781_v62 = vpop.eup %2780  ;;  %v1740_v24 = vmul.f32 %v2779_v22, %v3542_v4 }
 0x6c2   :  { %v1743_v36 = vmul.f32 %v2781_v62, %v2777_v23  ;;  %v2783_v37 = vpop.eup %2782 }
 0x6c3   :  { %v3606_v1 = vadd.f32 %v1742_v63, %v1740_v24  ;;  %v1741_v3 = vmul.f32 %v2783_v37, %v3546_v27  ;;  %v2785_v5 = vpop.eup %2784 }
 0x6c5   :  { %2786 = vtanh.f32 %v3606_v1  ;;  %v3610_v26 = vadd.f32 %v1743_v36, %v1741_v3 }
 0x6c6   :  { %2788 = vrcp.f32 %v1725_v25 }
 0x6c7   :  { %2790 = vtanh.f32 %v3610_v26 }
 0x6cf   :  { %v2787_v28 = vpop.eup %2786 }
 0x6d0   :  { %v2789_v29 = vpop.eup %2788  ;;  %v1748_v4 = vmul.f32 %v2787_v28, %v2785_v5  ;;  %v2592_v28 = vld [vmem:[#allocation9] sm:$0xff]  }
 0x6d1   :  { %v2791_v30 = vpop.eup %2790 }
 0x6d2   :  { %v1749_v32 = vmul.f32 %v2791_v30, %v2789_v29  ;;  %v3015_v29 = vmov 0.0   ;;  %v2594_v30 = vld [vmem:[#allocation9 + $0x10] sm:$0xff]  }
 0x6d4   :  { %v1759_v12 = vpack.c.bf16 %v1749_v32, %v1748_v4  ;;  %v2595_v4 = vld [vmem:[#allocation9 + $0x18] sm:$0xff]   ;;  %v2596_v32 = vld [vmem:[#allocation9 + $0x20] sm:$0xff]  }
 0x6d6   :  { %1793 = vmatmul.mubr.bf16.vlgmr.msra.gmra.mrb[24].mxu0 %v1759_v12  ;;  %1836 = vmatmul.mubr.bf16.vlgmr.msra.gmra.mrb[24].mxu1 %v1759_v12  ;;  %v2597_v12 = vld [vmem:[#allocation9 + $0x28] sm:$0xff]  }
 0x6d7   :  { %1913 = vmatpush1.bf16.msra.mxu0 %v3453_v42  ;;  %1956 = vmatpush1.bf16.msra.mxu1 %v3456_v9 }
 0x6d8   :  { %1914 = vmatprep.subr.bf16.mxu0 %v3459_v44  ;;  %1957 = vmatprep.subr.bf16.mxu1 %v3462_v45 }
 0x6d9   :  { %1944 = vmatprep.mubr.bf16.mxu0 %v3014_v0  ;;  %1987 = vmatprep.mubr.bf16.mxu1 %v3014_v0 }
 0x6db   :  { %1915 = vmatpush1.bf16.msra.mxu0 %v3467_v46  ;;  %1958 = vmatpush1.bf16.msra.mxu1 %v3470_v47 }
 0x6dc   :  { %1916 = vmatprep.subr.bf16.mxu0 %v3473_v48  ;;  %1959 = vmatprep.subr.bf16.mxu1 %v3476_v49 }
 0x6df   :  { %1917 = vmatpush1.bf16.msra.mxu0 %v3479_v50  ;;  %1960 = vmatpush1.bf16.msra.mxu1 %v3482_v51 }
 0x6e0   :  { %1918 = vmatprep.subr.bf16.mxu0 %v3485_v53  ;;  %1961 = vmatprep.subr.bf16.mxu1 %v3488_v54 }
 0x6e3   :  { %1919 = vmatpush1.bf16.msra.mxu0 %v3491_v55  ;;  %1962 = vmatpush1.bf16.msra.mxu1 %v3494_v56 }
 0x6e4   :  { %1920 = vmatprep.subr.bf16.mxu0 %v3497_v57  ;;  %1963 = vmatprep.subr.bf16.mxu1 %v3500_v58 }
 0x6e7   :  { %1921 = vmatpush1.bf16.msra.mxu0 %v3503_v59  ;;  %1964 = vmatpush1.bf16.msra.mxu1 %v3506_v60 }
 0x6e8   :  { %1922 = vmatprep.subr.bf16.mxu0 %v3509_v11  ;;  %1965 = vmatprep.subr.bf16.mxu1 %v3512_v18 }
 0x6eb   :  { %1923 = vmatpush1.bf16.msra.mxu0 %v3515_v20  ;;  %1966 = vmatpush1.bf16.msra.mxu1 %v3518_v8 }
 0x6ec   :  { %1924 = vmatprep.subr.bf16.mxu0 %v3521_v19  ;;  %1967 = vmatprep.subr.bf16.mxu1 %v3574_v7 }
 0x6ef   :  { %1925 = vmatpush1.bf16.msra.mxu0 %v3577_v43  ;;  %1968 = vmatpush1.bf16.msra.mxu1 %v3580_v6 }
 0x6f0   :  { %1926 = vmatprep.subr.bf16.mxu0 %v3583_v10  ;;  %1969 = vmatprep.subr.bf16.mxu1 %v3586_v14 }
 0x6f3   :  { %1927 = vmatpush1.bf16.msra.mxu0 %v3589_v17  ;;  %1970 = vmatpush1.bf16.msra.mxu1 %v3592_v13 }
 0x6f4   :  { %2326 = vmatprep.subr.bf16.mxu0 %v3015_v29 }
 0x7a9   :  { %v1794_v0 = vpop.f32.mrb[24].mxu0  ;;  %v1837_v42 = vpop.f32.mrb[24].mxu1 }
 0x7aa   :  { %v2370_v9 = vadd.f32 %v1794_v0, %v3277_v15  ;;  %v1796_v44 = vpop.f32.mrb[25].mxu0  ;;  %v1839_v45 = vpop.f32.mrb[25].mxu1  ;;  %v2402_v58 = vadd.f32 %v1837_v42, %v3284_v31  ;;  %v2598_v0 = vld [vmem:[#allocation9 + $0x30] sm:$0xff]   ;;  %v2599_v42 = vld [vmem:[#allocation9 + $0x38] sm:$0xff]  }
 0x7ab   :  { %v2371_v46 = vadd.f32 %v1796_v44, %v3279_v16  ;;  %v1798_v47 = vpop.f32.mrb[26].mxu0  ;;  %v1841_v48 = vpop.f32.mrb[26].mxu1  ;;  %v2403_v60 = vadd.f32 %v1839_v45, %v3287_v61 }
 0x7ac   :  { %v2296_v49 = vmul.f32 -1.442695, %v2370_v9  ;;  %v2372_v50 = vadd.f32 %v1798_v47, %v3277_v15  ;;  %v1800_v51 = vpop.f32.mrb[27].mxu0  ;;  %v1843_v53 = vpop.f32.mrb[27].mxu1  ;;  %v2404_v59 = vadd.f32 %v1841_v48, %v3284_v31  ;;  %v2298_v11 = vmul.f32 -1.442695, %v2402_v58 }
 0x7ad   :  { %v2297_v54 = vmul.f32 -1.442695, %v2371_v46  ;;  %v2373_v55 = vadd.f32 %v1800_v51, %v3279_v16  ;;  %v2405_v8 = vadd.f32 %v1843_v53, %v3287_v61 }
 0x7ae   :  { %2792 = vpow2.f32 %v2296_v49  ;;  %v2299_v56 = vmul.f32 -1.442695, %v2372_v50  ;;  %v2301_v18 = vmul.f32 -1.442695, %v2404_v59 }
 0x7af   :  { %v2300_v57 = vmul.f32 -1.442695, %v2373_v55  ;;  %2794 = vpow2.f32 %v2297_v54 }
 0x7b0   :  { %2796 = vpow2.f32 %v2299_v56 }
 0x7b1   :  { %2798 = vpow2.f32 %v2300_v57 }
 0x7b2   :  { %2800 = vtanh.f32 %v2403_v60 }
 0x7b3   :  { %2802 = vpow2.f32 %v2298_v11 }
 0x7b4   :  { %2804 = vpow2.f32 %v2301_v18 }
 0x7b8   :  { %v2793_v20 = vpop.eup %2792 }
 0x7b9   :  { %v1872_v19 = vadd.f32 1.0, %v2793_v20  ;;  %v2795_v27 = vpop.eup %2794 }
 0x7ba   :  { %v2797_v7 = vpop.eup %2796  ;;  %v1873_v43 = vadd.f32 1.0, %v2795_v27 }
 0x7bb   :  { %2806 = vrcp.f32 %v1872_v19  ;;  %v1875_v6 = vadd.f32 1.0, %v2797_v7  ;;  %v2799_v10 = vpop.eup %2798 }
 0x7bc   :  { %2808 = vtanh.f32 %v2405_v8  ;;  %v1876_v14 = vadd.f32 1.0, %v2799_v10  ;;  %v2801_v17 = vpop.eup %2800 }
 0x7bd   :  { %2810 = vrcp.f32 %v1873_v43  ;;  %v2803_v13 = vpop.eup %2802 }
 0x7be   :  { %2812 = vrcp.f32 %v1875_v6  ;;  %v2805_v33 = vpop.eup %2804  ;;  %v1874_v40 = vadd.f32 1.0, %v2803_v13 }
 0x7bf   :  { %2814 = vrcp.f32 %v1876_v14  ;;  %v1877_v22 = vadd.f32 1.0, %v2805_v33 }
 0x7c0   :  { %2816 = vrcp.f32 %v1874_v40 }
 0x7c5   :  { %v2807_v34 = vpop.eup %2806 }
 0x7c6   :  { %v2809_v52 = vpop.eup %2808  ;;  %v1894_v38 = vmul.f32 %v2807_v34, %v2801_v17 }
 0x7c7   :  { %v2811_v39 = vpop.eup %2810 }
 0x7c8   :  { %v2813_v35 = vpop.eup %2812  ;;  %v1892_v41 = vmul.f32 %v2811_v39, %v3606_v1 }
 0x7c9   :  { %v1895_v21 = vmul.f32 %v2813_v35, %v2809_v52  ;;  %v2815_v23 = vpop.eup %2814 }
 0x7ca   :  { %v3654_v63 = vadd.f32 %v1894_v38, %v1892_v41  ;;  %v1893_v62 = vmul.f32 %v2815_v23, %v3610_v26  ;;  %v2817_v24 = vpop.eup %2816  ;;  %v2593_v26 = vld [vmem:[#allocation9 + $0x8] sm:$0xff]  }
 0x7cc   :  { %2818 = vtanh.f32 %v3654_v63  ;;  %v3658_v2 = vadd.f32 %v1895_v21, %v1893_v62 }
 0x7cd   :  { %2820 = vrcp.f32 %v1877_v22 }
 0x7ce   :  { %2822 = vtanh.f32 %v3658_v2 }
 0x7d6   :  { %v2819_v36 = vpop.eup %2818 }
 0x7d7   :  { %v2821_v37 = vpop.eup %2820  ;;  %v1900_v1 = vmul.f32 %v2819_v36, %v2817_v24 }
 0x7d8   :  { %v2823_v25 = vpop.eup %2822 }
 0x7d9   :  { %v1901_v3 = vmul.f32 %v2823_v25, %v2821_v37 }
 0x7db   :  { %v1911_v5 = vpack.c.bf16 %v1901_v3, %v1900_v1 }
 0x7dd   :  { %1945 = vmatmul.mubr.bf16.vlgmr.msra.gmra.mrb[28].mxu0 %v1911_v5  ;;  %1988 = vmatmul.mubr.bf16.vlgmr.msra.gmra.mrb[28].mxu1 %v1911_v5 }
 0x7de   :  { %2327 = vmatpush3.bf16.msra.mxu0 %v2592_v28  ;;  %2342 = vmatprep.mubr.msk.bf16.mxu0 %vm3016_vm0, %v3015_v29 }
 0x7df   :  { %2328 = vmatprep.subr.bf16.mxu0 %v3015_v29 }
 0x7e2   :  { %2329 = vmatpush3.bf16.msra.mxu0 %v2593_v26 }
 0x7e3   :  { %2330 = vmatprep.subr.bf16.mxu0 %v3015_v29 }
 0x7e6   :  { %2331 = vmatpush3.bf16.msra.mxu0 %v2594_v30 }
 0x7e7   :  { %2332 = vmatprep.subr.bf16.mxu0 %v3015_v29 }
 0x7ea   :  { %2333 = vmatpush3.bf16.msra.mxu0 %v2595_v4 }
 0x7eb   :  { %2334 = vmatprep.subr.bf16.mxu0 %v3015_v29 }
 0x7ee   :  { %2335 = vmatpush3.bf16.msra.mxu0 %v2596_v32 }
 0x7ef   :  { %2336 = vmatprep.subr.bf16.mxu0 %v3015_v29 }
 0x7f2   :  { %2337 = vmatpush3.bf16.msra.mxu0 %v2597_v12 }
 0x7f3   :  { %2338 = vmatprep.subr.bf16.mxu0 %v3015_v29 }
 0x7f6   :  { %2339 = vmatpush3.bf16.msra.mxu0 %v2598_v0 }
 0x7f7   :  { %2340 = vmatprep.subr.bf16.mxu0 %v3015_v29 }
 0x7fa   :  { %2341 = vmatpush3.bf16.msra.mxu0 %v2599_v42 }
 0x8b0   :  { %v1946_v9 = vpop.f32.mrb[28].mxu0  ;;  %v1989_v44 = vpop.f32.mrb[28].mxu1 }
 0x8b1   :  { %v2374_v45 = vadd.f32 %v1946_v9, %v3277_v15  ;;  %v1948_v46 = vpop.f32.mrb[29].mxu0  ;;  %v1991_v47 = vpop.f32.mrb[29].mxu1  ;;  %v2406_v60 = vadd.f32 %v1989_v44, %v3284_v31 }
 0x8b2   :  { %v2375_v48 = vadd.f32 %v1948_v46, %v3279_v16  ;;  %v1950_v49 = vpop.f32.mrb[30].mxu0  ;;  %v1993_v50 = vpop.f32.mrb[30].mxu1  ;;  %v2407_v18 = vadd.f32 %v1991_v47, %v3287_v61 }
 0x8b3   :  { %v2302_v51 = vmul.f32 -1.442695, %v2374_v45  ;;  %v2376_v53 = vadd.f32 %v1950_v49, %v3277_v15  ;;  %v1952_v54 = vpop.f32.mrb[31].mxu0  ;;  %v1995_v55 = vpop.f32.mrb[31].mxu1  ;;  %v2408_v11 = vadd.f32 %v1993_v50, %v3284_v31  ;;  %v2304_v20 = vmul.f32 -1.442695, %v2406_v60 }
 0x8b4   :  { %v2303_v56 = vmul.f32 -1.442695, %v2375_v48  ;;  %v2377_v57 = vadd.f32 %v1952_v54, %v3279_v16  ;;  %v2409_v19 = vadd.f32 %v1995_v55, %v3287_v61 }
 0x8b5   :  { %2824 = vpow2.f32 %v2302_v51  ;;  %v2305_v58 = vmul.f32 -1.442695, %v2376_v53  ;;  %v2307_v8 = vmul.f32 -1.442695, %v2408_v11 }
 0x8b6   :  { %v2306_v59 = vmul.f32 -1.442695, %v2377_v57  ;;  %2826 = vpow2.f32 %v2303_v56 }
 0x8b7   :  { %2828 = vpow2.f32 %v2305_v58 }
 0x8b8   :  { %2830 = vpow2.f32 %v2306_v59 }
 0x8b9   :  { %2832 = vtanh.f32 %v2407_v18 }
 0x8ba   :  { %2834 = vpow2.f32 %v2304_v20 }
 0x8bb   :  { %2836 = vpow2.f32 %v2307_v8 }
 0x8bf   :  { %v2825_v15 = vpop.eup %2824 }
 0x8c0   :  { %v2024_v27 = vadd.f32 1.0, %v2825_v15  ;;  %v2827_v16 = vpop.eup %2826 }
 0x8c1   :  { %v2829_v7 = vpop.eup %2828  ;;  %v2025_v43 = vadd.f32 1.0, %v2827_v16 }
 0x8c2   :  { %2838 = vrcp.f32 %v2024_v27  ;;  %v2027_v6 = vadd.f32 1.0, %v2829_v7  ;;  %v2831_v10 = vpop.eup %2830 }
 0x8c3   :  { %2840 = vtanh.f32 %v2409_v19  ;;  %v2028_v31 = vadd.f32 1.0, %v2831_v10  ;;  %v2833_v14 = vpop.eup %2832 }
 0x8c4   :  { %2842 = vrcp.f32 %v2025_v43  ;;  %v2835_v17 = vpop.eup %2834 }
 0x8c5   :  { %2844 = vrcp.f32 %v2027_v6  ;;  %v2837_v13 = vpop.eup %2836  ;;  %v2026_v38 = vadd.f32 1.0, %v2835_v17 }
 0x8c6   :  { %2846 = vrcp.f32 %v2028_v31  ;;  %v2029_v23 = vadd.f32 1.0, %v2837_v13 }
 0x8c7   :  { %2848 = vrcp.f32 %v2026_v38 }
 0x8cc   :  { %v2839_v33 = vpop.eup %2838 }
 0x8cd   :  { %v2841_v34 = vpop.eup %2840  ;;  %v2046_v61 = vmul.f32 %v2839_v33, %v2833_v14 }
 0x8ce   :  { %v2843_v52 = vpop.eup %2842 }
 0x8cf   :  { %v2845_v39 = vpop.eup %2844  ;;  %v2044_v35 = vmul.f32 %v2843_v52, %v3654_v63  ;;  %v2308_v63 = vld [vmem:[%s3691_s5] ss:$0 sm:$0xff] }
 0x8d0   :  { %v2047_v40 = vmul.f32 %v2845_v39, %v2841_v34  ;;  %v2847_v41 = vpop.eup %2846 }
 0x8d1   :  { %v2048_v21 = vadd.f32 %v2046_v61, %v2044_v35  ;;  %v2045_v22 = vmul.f32 %v2847_v41, %v3658_v2  ;;  %v2849_v24 = vpop.eup %2848 }
 0x8d3   :  { %2850 = vtanh.f32 %v2048_v21  ;;  %v2049_v62 = vadd.f32 %v2047_v40, %v2045_v22 }
 0x8d4   :  { %2852 = vrcp.f32 %v2029_v23 }
 0x8d5   :  { %2854 = vtanh.f32 %v2049_v62 }
 0x8dd   :  { %v2851_v36 = vpop.eup %2850 }
 0x8de   :  { %v2052_v37 = vmul.f32 %v2851_v36, %v2849_v24  ;;  %v2853_v25 = vpop.eup %2852 }
 0x8df   :  { %v2855_v1 = vpop.eup %2854 }
 0x8e0   :  { %v2053_v3 = vmul.f32 %v2855_v1, %v2853_v25 }
 0x8e2   :  { %v2054_v5 = vpack.c.bf16 %v2053_v3, %v2052_v37 }
 0x8e4   :  { %2343 = vmatmul.mubr.bf16.vlgmr.msra.gmra.mrb[32].mxu0 %v2054_v5 }
 0x9b7   :  { %v2160_v28 = vpop.f32.mrb[32].mxu0 }
 0x9b8   :  { %v2161_v2 = vadd.f32 %v2308_v63, %v2160_v28  ;;  %v2344_v29 = vpop.f32.mrb[33].mxu0 }
 0x9b9   :  { %v2163_v26 = vpop.f32.mrb[34].mxu0 }
 0x9ba   :  { %2167 = vst [vmem:[#allocation11] sm:$0xff] %v2161_v2  ;;  %v2164_v30 = vadd.f32 %v2308_v63, %v2163_v26  ;;  %v2345_v4 = vpop.f32.mrb[35].mxu0 }
 0x9bc   :  { %2168 = vst [vmem:[#allocation11 + $0x8] sm:$0xff] %v2164_v30 }
 0x9bd   :  { %2987 = shalt.err (!%p2984_p8)
}
 0x9be   :  { %s2988_s27 = scalar_lea.hbm %s3692_s6, 256 }
 0x9bf   :  { %p2989_p9 = scmp.ne.s32.totalorder %s3692_s6, %s2988_s27  ;;  %p2992_p10 = scmp.lt.u32.totalorder %s2988_s27, %s3692_s6 }
 0x9c1   :  { %p2994_p11 = pnand %p2992_p10, %p2989_p9 }
 0x9c3   :  { %2997 = shalt.err (!%p2994_p11)
}
 0x9c4   :  { %s3018_s10 = smov 128   ;;  %s3019_s11 = smov 8  }
 0x9c5   :  { %2180 = dma.vmem_to_hbm [thread:$0]  %s2175_s24, 256, %s3692_s6, [#allocation5], %s3018_s10, %s3018_s10, %s3019_s11  }
 0x9c6   :  { %3004 = dma.done.wait [#allocation5], 256  }
 0x9c7   :  { %3005 = vsyncadd [#allocation5], 4294967040 }
 0x9c8   :  { %2184 = vsyncpa [#allocation4], 1 }
 0x9c9   :  { %2185 = vsyncpa [#allocation7], 1 }
 0x9ca   :  { %2186 = vsyncpa [#allocation10], 1 }
 0x9cb   :  { %2187 = vsyncpa [#allocation5], 1 }

</bundles_post_ra>
